<compile_context>
chip_gen: v7x
topology: tpu7x:2x2x1
jax: 0.10.0
libtpu: 0.0.40
codegen_flags: <defaults>
</compile_context>

<pallas_src>
import math

import jax
import jax.numpy as jnp
from jax import lax
from jax.experimental import pallas as pl
from jax.experimental.pallas import tpu as pltpu


# ----------------------------- Pallas kernel ------------------------------

def _make_fused_kernel(n_branches):
    def kernel(*refs):
        cols = refs[:n_branches]                    # n x (tm, Cin_k*9)  bf16
        ws = refs[n_branches:2 * n_branches]        # n x (Cin_k*9, E)   bf16
        bias_ref, gamma_ref, beta_ref, o_ref = refs[2 * n_branches:]

        # 7 lane-dense (tm, E) MXU matmuls, bf16 x bf16 -> f32 accumulation,
        # summed in f32 registers (conv weights pre-folded through the proj).
        acc = jnp.dot(cols[0][...], ws[0][...],
                      preferred_element_type=jnp.float32)
        for k in range(1, n_branches):
            acc += jnp.dot(cols[k][...], ws[k][...],
                           preferred_element_type=jnp.float32)
        y = acc + bias_ref[...]                     # fused conv+proj bias

        # LayerNorm(embed_dim) in f32 (rsqrt goes to the EUP slot).
        mean = jnp.mean(y, axis=-1, keepdims=True)
        var = jnp.mean(jnp.square(y - mean), axis=-1, keepdims=True)
        yhat = (y - mean) * lax.rsqrt(var + 1e-5)
        o_ref[...] = yhat * gamma_ref[...] + beta_ref[...]

    return kernel


# ------------------------------- JAX glue ---------------------------------

def _round_up(x, m):
    return ((x + m - 1) // m) * m


def im2col(x, stride, pad, dil, ksize=3):
    """x: (N, C, H, W) -> (N*Ho*Wo, C*ksize*ksize), tokens ordered (n, oh, ow)."""
    N, C, H, W = x.shape
    xp = jnp.pad(x, ((0, 0), (0, 0), (pad, pad), (pad, pad)))
    Ho = (H + 2 * pad - dil * (ksize - 1) - 1) // stride + 1
    Wo = (W + 2 * pad - dil * (ksize - 1) - 1) // stride + 1
    cols = []
    for kh in range(ksize):
        for kw in range(ksize):
            patch = xp[:, :,
                       kh * dil: kh * dil + (Ho - 1) * stride + 1: stride,
                       kw * dil: kw * dil + (Wo - 1) * stride + 1: stride]
            cols.append(patch)                      # (N, C, Ho, Wo)
    cols = jnp.stack(cols, axis=2)                  # (N, C, 9, Ho, Wo)
    cols = cols.transpose(0, 3, 4, 1, 2)            # (N, Ho, Wo, C, 9)
    return cols.reshape(N * Ho * Wo, C * ksize * ksize), Ho, Wo


def init_params(key, in_dims, embed_dim):
    """Deterministic init matching the PyTorch module's _init_weights."""
    base = in_dims[0]
    n_layers = sum(2 ** i for i in range(len(in_dims)))
    keys = jax.random.split(key, n_layers + 1)
    params = {"convs": []}
    k = 0
    for i in range(len(in_dims)):
        cin = in_dims[-1 - i]
        for j in range(2 ** i):
            fan_out = 3 * 3 * base
            std = math.sqrt(2.0 / fan_out)
            w = std * jax.random.normal(keys[k], (base, cin, 3, 3), jnp.float32)
            b = jnp.zeros((base,), jnp.float32)
            params["convs"].append(
                dict(w=w, b=b, stride=2 ** (i + 1), pad=1 + j, dil=1 + j))
            k += 1
    fan_out = 1 * 1 * embed_dim
    std = math.sqrt(2.0 / fan_out)
    params["proj_w"] = std * jax.random.normal(
        keys[-1], (embed_dim, base * n_layers, 1, 1), jnp.float32)
    params["proj_b"] = jnp.zeros((embed_dim,), jnp.float32)
    params["ln_g"] = jnp.ones((embed_dim,), jnp.float32)
    params["ln_b"] = jnp.zeros((embed_dim,), jnp.float32)
    return params


def cross_scale_patch_embed(xs, params, tm=256):
    """Fused CrossScalePatchEmbed forward.  Returns ((N, Ho*Wo, E), Ho, Wo).

    tm: row tile (multiple of 8).  256 targets the 2x256x256 MXUs on v6e/v7x;
    128 is fine on v5e.  Per-step VMEM at tm=256 is ~3 MiB including
    double-buffering, well under the default scoped limit on all chips.
    """
    assert tm % 8 == 0

    base = params["convs"][0]["w"].shape[0]
    E = params["proj_w"].shape[0]
    wproj = params["proj_w"].reshape(E, -1).T          # (n*base, E) f32

    cols_list, w_list, b_list = [], [], []
    Ho = Wo = None
    k = 0
    for i in range(len(xs)):
        for _ in range(2 ** i):
            cfg = params["convs"][k]
            cols, Ho, Wo = im2col(xs[-1 - i], cfg["stride"], cfg["pad"], cfg["dil"])
            cols_list.append(cols.astype(jnp.bfloat16))
            # (Cout, Cin, 3, 3) -> (Cin*9, base), then fold through the 1x1
            # proj slice in f32 on the host -> (Cin*9, E) lane-dense weight.
            w_col = cfg["w"].reshape(base, -1).T
            w_list.append(
                (w_col @ wproj[k * base:(k + 1) * base, :]).astype(jnp.bfloat16))
            b_list.append(cfg["b"])
            k += 1

    n = len(cols_list)
    M = cols_list[0].shape[0]
    assert all(c.shape[0] == M for c in cols_list)
    N = xs[0].shape[0]

    # Row tiling: clamp tm for tiny inputs, pad M up to a multiple of tm so
    # the pl.cdiv grid covers every row (padded rows are sliced off at the end).
    tm = min(tm, _round_up(M, 128))
    M_pad = pl.cdiv(M, tm) * tm
    if M_pad != M:
        cols_list = [jnp.pad(c, ((0, M_pad - M), (0, 0))) for c in cols_list]

    # Fold all 7 conv biases + the proj bias into a single (1, E) bias.
    b_fused = jnp.concatenate(b_list)[None, :] @ wproj + params["proj_b"][None, :]

    in_specs = (
        [pl.BlockSpec((tm, c.shape[1]), lambda i: (i, 0)) for c in cols_list]
        + [pl.BlockSpec(w.shape, lambda i: (0, 0)) for w in w_list]
        + [pl.BlockSpec((1, E), lambda i: (0, 0)),
           pl.BlockSpec((1, E), lambda i: (0, 0)),
           pl.BlockSpec((1, E), lambda i: (0, 0))]
    )

    out = pl.pallas_call(
        _make_fused_kernel(n),
        out_shape=jax.ShapeDtypeStruct((M_pad, E), jnp.float32),
        grid=(pl.cdiv(M_pad, tm),),
        in_specs=in_specs,
        out_specs=pl.BlockSpec((tm, E), lambda i: (i, 0)),
        compiler_params=pltpu.CompilerParams(
            dimension_semantics=("parallel",)),
    )(*cols_list, *w_list, b_fused,
      params["ln_g"].reshape(1, E), params["ln_b"].reshape(1, E))

    return out[:M].reshape(N, Ho * Wo, E), Ho, Wo


# -------------------------- pure-JAX reference -----------------------------

def reference(xs, params):
    ys = []
    k = 0
    for i in range(len(xs)):
        for _ in range(2 ** i):
            cfg = params["convs"][k]
            y = lax.conv_general_dilated(
                xs[-1 - i], cfg["w"],
                window_strides=(cfg["stride"],) * 2,
                padding=[(cfg["pad"], cfg["pad"])] * 2,
                rhs_dilation=(cfg["dil"],) * 2,
                dimension_numbers=("NCHW", "OIHW", "NCHW"),
                precision=lax.Precision.HIGHEST)
            ys.append(y + cfg["b"][None, :, None, None])
            k += 1
    x = jnp.concatenate(ys, axis=1)
    x = lax.conv_general_dilated(
        x, params["proj_w"], (1, 1), [(0, 0), (0, 0)],
        dimension_numbers=("NCHW", "OIHW", "NCHW"),
        precision=lax.Precision.HIGHEST)
    x = x + params["proj_b"][None, :, None, None]
    N, E, H, W = x.shape
    x = x.reshape(N, E, H * W).transpose(0, 2, 1)
    mean = x.mean(-1, keepdims=True)
    var = ((x - mean) ** 2).mean(-1, keepdims=True)
    x = (x - mean) / jnp.sqrt(var + 1e-5)
    x = x * params["ln_g"] + params["ln_b"]
    return x, H, W


# --------------------------------- main ------------------------------------

if __name__ == "__main__":
    in_dims = [16, 32, 64]
    embed_dim = 128
    N, S = 4, 64     # output tokens: M = N * (S/8)^2 = 256 -> 2 row tiles of 128

    key = jax.random.PRNGKey(0)
    kx0, kx1, kx2, kp = jax.random.split(key, 4)
    # xs[0]: finest resolution / fewest channels, xs[2]: coarsest / most channels.
    xs = [
        jax.random.normal(kx0, (N, in_dims[0], S, S), jnp.float32),
        jax.random.normal(kx1, (N, in_dims[1], S // 2, S // 2), jnp.float32),
        jax.random.normal(kx2, (N, in_dims[2], S // 4, S // 4), jnp.float32),
    ]
    params = init_params(kp, in_dims, embed_dim)

    # tm=128 gives 2 grid steps at this toy size (both v7x TensorCores get
    # work); the default tm=256 is preferred once M is larger.
    out, H, W = cross_scale_patch_embed(xs, params, tm=128)
    out = jax.block_until_ready(out)

    ref, Hr, Wr = reference(xs, params)
    assert (H, W) == (Hr, Wr), ((H, W), (Hr, Wr))
    max_err = float(jnp.max(jnp.abs(out - ref)))
    # bf16 MXU inputs / fused bf16 weights with f32 accumulation vs. an f32
    # HIGHEST reference: post-LayerNorm error is ~1e-2 worst case.
    assert jnp.allclose(out, ref, rtol=2e-2, atol=3e-2), max_err

    print("KERNEL_OK")
</pallas_src>

<mosaic_0001>
module attributes {stable_mosaic.version = 11 : i64} {
  func.func @kernel(%arg0: i32, %arg1: memref<128x576xbf16, #tpu.memory_space<vmem>>, %arg2: memref<128x288xbf16, #tpu.memory_space<vmem>>, %arg3: memref<128x288xbf16, #tpu.memory_space<vmem>>, %arg4: memref<128x144xbf16, #tpu.memory_space<vmem>>, %arg5: memref<128x144xbf16, #tpu.memory_space<vmem>>, %arg6: memref<128x144xbf16, #tpu.memory_space<vmem>>, %arg7: memref<128x144xbf16, #tpu.memory_space<vmem>>, %arg8: memref<576x128xbf16, #tpu.memory_space<vmem>>, %arg9: memref<288x128xbf16, #tpu.memory_space<vmem>>, %arg10: memref<288x128xbf16, #tpu.memory_space<vmem>>, %arg11: memref<144x128xbf16, #tpu.memory_space<vmem>>, %arg12: memref<144x128xbf16, #tpu.memory_space<vmem>>, %arg13: memref<144x128xbf16, #tpu.memory_space<vmem>>, %arg14: memref<144x128xbf16, #tpu.memory_space<vmem>>, %arg15: memref<1x128xf32, #tpu.memory_space<vmem>>, %arg16: memref<1x128xf32, #tpu.memory_space<vmem>>, %arg17: memref<1x128xf32, #tpu.memory_space<vmem>>, %arg18: memref<128x128xf32, #tpu.memory_space<vmem>>) attributes {dimension_semantics = [#tpu.dimension_semantics<parallel>], iteration_bounds = array<i64: 2>, scalar_prefetch = 0 : i64, scratch_operands = 0 : i64, tpu.core_type = #tpu.core_type<tc>, window_params = [{transform_indices = @transform_0, window_bounds = array<i64: 128, 576>}, {transform_indices = @transform_1, window_bounds = array<i64: 128, 288>}, {transform_indices = @transform_2, window_bounds = array<i64: 128, 288>}, {transform_indices = @transform_3, window_bounds = array<i64: 128, 144>}, {transform_indices = @transform_4, window_bounds = array<i64: 128, 144>}, {transform_indices = @transform_5, window_bounds = array<i64: 128, 144>}, {transform_indices = @transform_6, window_bounds = array<i64: 128, 144>}, {pipeline_mode = #tpu.pipeline_mode<synchronous>, transform_indices = @transform_7, window_bounds = array<i64: 576, 128>}, {pipeline_mode = #tpu.pipeline_mode<synchronous>, transform_indices = @transform_8, window_bounds = array<i64: 288, 128>}, {pipeline_mode = #tpu.pipeline_mode<synchronous>, transform_indices = @transform_9, window_bounds = array<i64: 288, 128>}, {pipeline_mode = #tpu.pipeline_mode<synchronous>, transform_indices = @transform_10, window_bounds = array<i64: 144, 128>}, {pipeline_mode = #tpu.pipeline_mode<synchronous>, transform_indices = @transform_11, window_bounds = array<i64: 144, 128>}, {pipeline_mode = #tpu.pipeline_mode<synchronous>, transform_indices = @transform_12, window_bounds = array<i64: 144, 128>}, {pipeline_mode = #tpu.pipeline_mode<synchronous>, transform_indices = @transform_13, window_bounds = array<i64: 144, 128>}, {pipeline_mode = #tpu.pipeline_mode<synchronous>, transform_indices = @transform_14, window_bounds = array<i64: 1, 128>}, {pipeline_mode = #tpu.pipeline_mode<synchronous>, transform_indices = @transform_15, window_bounds = array<i64: 1, 128>}, {pipeline_mode = #tpu.pipeline_mode<synchronous>, transform_indices = @transform_16, window_bounds = array<i64: 1, 128>}, {transform_indices = @transform_17, window_bounds = array<i64: 128, 128>}]} {
    %c0 = arith.constant 0 : index
    %c0_0 = arith.constant 0 : index
    %0 = vector.load %arg1[%c0, %c0_0] : memref<128x576xbf16, #tpu.memory_space<vmem>>, vector<128x576xbf16>
    %c0_1 = arith.constant 0 : index
    %c0_2 = arith.constant 0 : index
    %1 = vector.load %arg8[%c0_1, %c0_2] : memref<576x128xbf16, #tpu.memory_space<vmem>>, vector<576x128xbf16>
    %cst = arith.constant dense<0.000000e+00> : vector<128x128xf32>
    %2 = tpu.matmul %0, %1, %cst {dimension_numbers = #tpu.dot_dimension_numbers<[1], [0], [0], [1], [0, 0, 1, 1], [], []>} : vector<128x576xbf16>, vector<576x128xbf16>, vector<128x128xf32> -> vector<128x128xf32>
    %c0_3 = arith.constant 0 : index
    %c0_4 = arith.constant 0 : index
    %3 = vector.load %arg2[%c0_3, %c0_4] : memref<128x288xbf16, #tpu.memory_space<vmem>>, vector<128x288xbf16>
    %c0_5 = arith.constant 0 : index
    %c0_6 = arith.constant 0 : index
    %4 = vector.load %arg9[%c0_5, %c0_6] : memref<288x128xbf16, #tpu.memory_space<vmem>>, vector<288x128xbf16>
    %cst_7 = arith.constant dense<0.000000e+00> : vector<128x128xf32>
    %5 = tpu.matmul %3, %4, %cst_7 {dimension_numbers = #tpu.dot_dimension_numbers<[1], [0], [0], [1], [0, 0, 1, 1], [], []>} : vector<128x288xbf16>, vector<288x128xbf16>, vector<128x128xf32> -> vector<128x128xf32>
    %6 = arith.addf %2, %5 : vector<128x128xf32>
    %c0_8 = arith.constant 0 : index
    %c0_9 = arith.constant 0 : index
    %7 = vector.load %arg3[%c0_8, %c0_9] : memref<128x288xbf16, #tpu.memory_space<vmem>>, vector<128x288xbf16>
    %c0_10 = arith.constant 0 : index
    %c0_11 = arith.constant 0 : index
    %8 = vector.load %arg10[%c0_10, %c0_11] : memref<288x128xbf16, #tpu.memory_space<vmem>>, vector<288x128xbf16>
    %cst_12 = arith.constant dense<0.000000e+00> : vector<128x128xf32>
    %9 = tpu.matmul %7, %8, %cst_12 {dimension_numbers = #tpu.dot_dimension_numbers<[1], [0], [0], [1], [0, 0, 1, 1], [], []>} : vector<128x288xbf16>, vector<288x128xbf16>, vector<128x128xf32> -> vector<128x128xf32>
    %10 = arith.addf %6, %9 : vector<128x128xf32>
    %c0_13 = arith.constant 0 : index
    %c0_14 = arith.constant 0 : index
    %11 = vector.load %arg4[%c0_13, %c0_14] : memref<128x144xbf16, #tpu.memory_space<vmem>>, vector<128x144xbf16>
    %c0_15 = arith.constant 0 : index
    %c0_16 = arith.constant 0 : index
    %12 = vector.load %arg11[%c0_15, %c0_16] : memref<144x128xbf16, #tpu.memory_space<vmem>>, vector<144x128xbf16>
    %cst_17 = arith.constant dense<0.000000e+00> : vector<128x128xf32>
    %13 = tpu.matmul %11, %12, %cst_17 {dimension_numbers = #tpu.dot_dimension_numbers<[1], [0], [0], [1], [0, 0, 1, 1], [], []>} : vector<128x144xbf16>, vector<144x128xbf16>, vector<128x128xf32> -> vector<128x128xf32>
    %14 = arith.addf %10, %13 : vector<128x128xf32>
    %c0_18 = arith.constant 0 : index
    %c0_19 = arith.constant 0 : index
    %15 = vector.load %arg5[%c0_18, %c0_19] : memref<128x144xbf16, #tpu.memory_space<vmem>>, vector<128x144xbf16>
    %c0_20 = arith.constant 0 : index
    %c0_21 = arith.constant 0 : index
    %16 = vector.load %arg12[%c0_20, %c0_21] : memref<144x128xbf16, #tpu.memory_space<vmem>>, vector<144x128xbf16>
    %cst_22 = arith.constant dense<0.000000e+00> : vector<128x128xf32>
    %17 = tpu.matmul %15, %16, %cst_22 {dimension_numbers = #tpu.dot_dimension_numbers<[1], [0], [0], [1], [0, 0, 1, 1], [], []>} : vector<128x144xbf16>, vector<144x128xbf16>, vector<128x128xf32> -> vector<128x128xf32>
    %18 = arith.addf %14, %17 : vector<128x128xf32>
    %c0_23 = arith.constant 0 : index
    %c0_24 = arith.constant 0 : index
    %19 = vector.load %arg6[%c0_23, %c0_24] : memref<128x144xbf16, #tpu.memory_space<vmem>>, vector<128x144xbf16>
    %c0_25 = arith.constant 0 : index
    %c0_26 = arith.constant 0 : index
    %20 = vector.load %arg13[%c0_25, %c0_26] : memref<144x128xbf16, #tpu.memory_space<vmem>>, vector<144x128xbf16>
    %cst_27 = arith.constant dense<0.000000e+00> : vector<128x128xf32>
    %21 = tpu.matmul %19, %20, %cst_27 {dimension_numbers = #tpu.dot_dimension_numbers<[1], [0], [0], [1], [0, 0, 1, 1], [], []>} : vector<128x144xbf16>, vector<144x128xbf16>, vector<128x128xf32> -> vector<128x128xf32>
    %22 = arith.addf %18, %21 : vector<128x128xf32>
    %c0_28 = arith.constant 0 : index
    %c0_29 = arith.constant 0 : index
    %23 = vector.load %arg7[%c0_28, %c0_29] : memref<128x144xbf16, #tpu.memory_space<vmem>>, vector<128x144xbf16>
    %c0_30 = arith.constant 0 : index
    %c0_31 = arith.constant 0 : index
    %24 = vector.load %arg14[%c0_30, %c0_31] : memref<144x128xbf16, #tpu.memory_space<vmem>>, vector<144x128xbf16>
    %cst_32 = arith.constant dense<0.000000e+00> : vector<128x128xf32>
    %25 = tpu.matmul %23, %24, %cst_32 {dimension_numbers = #tpu.dot_dimension_numbers<[1], [0], [0], [1], [0, 0, 1, 1], [], []>} : vector<128x144xbf16>, vector<144x128xbf16>, vector<128x128xf32> -> vector<128x128xf32>
    %26 = arith.addf %22, %25 : vector<128x128xf32>
    %c0_33 = arith.constant 0 : index
    %c0_34 = arith.constant 0 : index
    %27 = vector.load %arg15[%c0_33, %c0_34] : memref<1x128xf32, #tpu.memory_space<vmem>>, vector<1x128xf32>
    %28 = vector.broadcast %27 : vector<1x128xf32> to vector<128x128xf32>
    %29 = arith.addf %26, %28 : vector<128x128xf32>
    %cst_35 = arith.constant dense<0.000000e+00> : vector<128xf32>
    %30 = vector.multi_reduction <add>, %29, %cst_35 [1] : vector<128x128xf32> to vector<128xf32>
    %31 = vector.shape_cast %30 : vector<128xf32> to vector<128x1xf32>
    %cst_36 = arith.constant 1.280000e+02 : f32
    %32 = vector.broadcast %cst_36 : f32 to vector<128x1xf32>
    %33 = arith.divf %31, %32 : vector<128x1xf32>
    %34 = vector.broadcast %33 : vector<128x1xf32> to vector<128x128xf32>
    %35 = arith.subf %29, %34 : vector<128x128xf32>
    %36 = arith.mulf %35, %35 : vector<128x128xf32>
    %cst_37 = arith.constant dense<0.000000e+00> : vector<128xf32>
    %37 = vector.multi_reduction <add>, %36, %cst_37 [1] : vector<128x128xf32> to vector<128xf32>
    %38 = vector.shape_cast %37 : vector<128xf32> to vector<128x1xf32>
    %cst_38 = arith.constant 1.280000e+02 : f32
    %39 = vector.broadcast %cst_38 : f32 to vector<128x1xf32>
    %40 = arith.divf %38, %39 : vector<128x1xf32>
    %41 = vector.broadcast %33 : vector<128x1xf32> to vector<128x128xf32>
    %42 = arith.subf %29, %41 : vector<128x128xf32>
    %cst_39 = arith.constant 9.99999974E-6 : f32
    %43 = vector.broadcast %cst_39 : f32 to vector<128x1xf32>
    %44 = arith.addf %40, %43 : vector<128x1xf32>
    %45 = math.rsqrt %44 : vector<128x1xf32>
    %46 = vector.broadcast %45 : vector<128x1xf32> to vector<128x128xf32>
    %47 = arith.mulf %42, %46 : vector<128x128xf32>
    %c0_40 = arith.constant 0 : index
    %c0_41 = arith.constant 0 : index
    %48 = vector.load %arg16[%c0_40, %c0_41] : memref<1x128xf32, #tpu.memory_space<vmem>>, vector<1x128xf32>
    %49 = vector.broadcast %48 : vector<1x128xf32> to vector<128x128xf32>
    %50 = arith.mulf %47, %49 : vector<128x128xf32>
    %c0_42 = arith.constant 0 : index
    %c0_43 = arith.constant 0 : index
    %51 = vector.load %arg17[%c0_42, %c0_43] : memref<1x128xf32, #tpu.memory_space<vmem>>, vector<1x128xf32>
    %52 = vector.broadcast %51 : vector<1x128xf32> to vector<128x128xf32>
    %53 = arith.addf %50, %52 : vector<128x128xf32>
    %c0_44 = arith.constant 0 : index
    %c0_45 = arith.constant 0 : index
    %54 = vector.load %arg18[%c0_44, %c0_45] : memref<128x128xf32, #tpu.memory_space<vmem>>, vector<128x128xf32>
    tpu.vector_store %arg18[%c0_44, %c0_45], %53 {strides = array<i32>} : memref<128x128xf32, #tpu.memory_space<vmem>>, vector<128x128xf32>,
    return
  }
  func.func @transform_0(%arg0: i32) -> (i32, i32) {
    %c0_i32 = arith.constant 0 : i32
    %c0_i32_0 = arith.constant 0 : i32
    return %arg0, %c0_i32 : i32, i32
  }
  func.func @transform_1(%arg0: i32) -> (i32, i32) {
    %c0_i32 = arith.constant 0 : i32
    %c0_i32_0 = arith.constant 0 : i32
    return %arg0, %c0_i32 : i32, i32
  }
  func.func @transform_2(%arg0: i32) -> (i32, i32) {
    %c0_i32 = arith.constant 0 : i32
    %c0_i32_0 = arith.constant 0 : i32
    return %arg0, %c0_i32 : i32, i32
  }
  func.func @transform_3(%arg0: i32) -> (i32, i32) {
    %c0_i32 = arith.constant 0 : i32
    %c0_i32_0 = arith.constant 0 : i32
    return %arg0, %c0_i32 : i32, i32
  }
  func.func @transform_4(%arg0: i32) -> (i32, i32) {
    %c0_i32 = arith.constant 0 : i32
    %c0_i32_0 = arith.constant 0 : i32
    return %arg0, %c0_i32 : i32, i32
  }
  func.func @transform_5(%arg0: i32) -> (i32, i32) {
    %c0_i32 = arith.constant 0 : i32
    %c0_i32_0 = arith.constant 0 : i32
    return %arg0, %c0_i32 : i32, i32
  }
  func.func @transform_6(%arg0: i32) -> (i32, i32) {
    %c0_i32 = arith.constant 0 : i32
    %c0_i32_0 = arith.constant 0 : i32
    return %arg0, %c0_i32 : i32, i32
  }
  func.func @transform_7(%arg0: i32) -> (i32, i32) {
    %c0_i32 = arith.constant 0 : i32
    %c0_i32_0 = arith.constant 0 : i32
    %c0_i32_1 = arith.constant 0 : i32
    return %c0_i32, %c0_i32_0 : i32, i32
  }
  func.func @transform_8(%arg0: i32) -> (i32, i32) {
    %c0_i32 = arith.constant 0 : i32
    %c0_i32_0 = arith.constant 0 : i32
    %c0_i32_1 = arith.constant 0 : i32
    return %c0_i32, %c0_i32_0 : i32, i32
  }
  func.func @transform_9(%arg0: i32) -> (i32, i32) {
    %c0_i32 = arith.constant 0 : i32
    %c0_i32_0 = arith.constant 0 : i32
    %c0_i32_1 = arith.constant 0 : i32
    return %c0_i32, %c0_i32_0 : i32, i32
  }
  func.func @transform_10(%arg0: i32) -> (i32, i32) {
    %c0_i32 = arith.constant 0 : i32
    %c0_i32_0 = arith.constant 0 : i32
    %c0_i32_1 = arith.constant 0 : i32
    return %c0_i32, %c0_i32_0 : i32, i32
  }
  func.func @transform_11(%arg0: i32) -> (i32, i32) {
    %c0_i32 = arith.constant 0 : i32
    %c0_i32_0 = arith.constant 0 : i32
    %c0_i32_1 = arith.constant 0 : i32
    return %c0_i32, %c0_i32_0 : i32, i32
  }
  func.func @transform_12(%arg0: i32) -> (i32, i32) {
    %c0_i32 = arith.constant 0 : i32
    %c0_i32_0 = arith.constant 0 : i32
    %c0_i32_1 = arith.constant 0 : i32
    return %c0_i32, %c0_i32_0 : i32, i32
  }
  func.func @transform_13(%arg0: i32) -> (i32, i32) {
    %c0_i32 = arith.constant 0 : i32
    %c0_i32_0 = arith.constant 0 : i32
    %c0_i32_1 = arith.constant 0 : i32
    return %c0_i32, %c0_i32_0 : i32, i32
  }
  func.func @transform_14(%arg0: i32) -> (i32, i32) {
    %c0_i32 = arith.constant 0 : i32
    %c0_i32_0 = arith.constant 0 : i32
    %c0_i32_1 = arith.constant 0 : i32
    return %c0_i32, %c0_i32_0 : i32, i32
  }
  func.func @transform_15(%arg0: i32) -> (i32, i32) {
    %c0_i32 = arith.constant 0 : i32
    %c0_i32_0 = arith.constant 0 : i32
    %c0_i32_1 = arith.constant 0 : i32
    return %c0_i32, %c0_i32_0 : i32, i32
  }
  func.func @transform_16(%arg0: i32) -> (i32, i32) {
    %c0_i32 = arith.constant 0 : i32
    %c0_i32_0 = arith.constant 0 : i32
    %c0_i32_1 = arith.constant 0 : i32
    return %c0_i32, %c0_i32_0 : i32, i32
  }
  func.func @transform_17(%arg0: i32) -> (i32, i32) {
    %c0_i32 = arith.constant 0 : i32
    %c0_i32_0 = arith.constant 0 : i32
    return %arg0, %c0_i32 : i32, i32
  }
}

</mosaic_0001>

<bundles_post_ra>
// kernel: tpu_custom_call.1
= control target key start
LH: loop header
LB: loop body
LE: loop exit
PB: predicated region body
PF: predicated region fallthrough
CT: control target
= control target key end

     0   :  { %s6749_s0 = inlined_call_operand.vmem [shape: bf16[256,576], index: 0, kind: input, shape index: {}]   ;;  %s6750_s1 = inlined_call_operand.vmem [shape: bf16[256,288], index: 1, kind: input, shape index: {}]   ;;  %s6751_s2 = inlined_call_operand.vmem [shape: bf16[256,288], index: 2, kind: input, shape index: {}]   ;;  %s6752_s3 = inlined_call_operand.vmem [shape: bf16[256,144], index: 3, kind: input, shape index: {}]   ;;  %s6753_s4 = inlined_call_operand.vmem [shape: bf16[256,144], index: 4, kind: input, shape index: {}]   ;;  %s6754_s5 = inlined_call_operand.vmem [shape: bf16[256,144], index: 5, kind: input, shape index: {}]   ;;  %s6755_s6 = inlined_call_operand.vmem [shape: bf16[256,144], index: 6, kind: input, shape index: {}]   ;;  %s6756_s7 = inlined_call_operand.vmem [shape: bf16[576,128], index: 7, kind: input, shape index: {}]   ;;  %s6757_s8 = inlined_call_operand.vmem [shape: bf16[288,128], index: 8, kind: input, shape index: {}]   ;;  %s6758_s9 = inlined_call_operand.vmem [shape: bf16[288,128], index: 9, kind: input, shape index: {}]   ;;  %s6759_s10 = inlined_call_operand.vmem [shape: bf16[144,128], index: 10, kind: input, shape index: {}]   ;;  %s6760_s11 = inlined_call_operand.vmem [shape: bf16[144,128], index: 11, kind: input, shape index: {}]   ;;  %s6761_s12 = inlined_call_operand.vmem [shape: bf16[144,128], index: 12, kind: input, shape index: {}]   ;;  %s6762_s13 = inlined_call_operand.vmem [shape: bf16[144,128], index: 13, kind: input, shape index: {}]   ;;  %s6763_s14 = inlined_call_operand.vmem [shape: f32[1,128], index: 14, kind: input, shape index: {}]   ;;  %s6764_s15 = inlined_call_operand.vmem [shape: f32[1,128], index: 15, kind: input, shape index: {}]   ;;  %s6765_s16 = inlined_call_operand.vmem [shape: f32[1,128], index: 16, kind: input, shape index: {}]   ;;  %s6766_s17 = inlined_call_operand.hbm [shape: f32[256,128], index: 17, kind: output, shape index: {}]  }
   0x1   :  { %6774 = sst [smem:[#allocation11_spill]] %s6749_s0 }
   0x2   :  { %6775 = sst [smem:[#allocation12_spill]] %s6750_s1 }
   0x3   :  { %6776 = sst [smem:[#allocation13_spill]] %s6757_s8 }
   0x4   :  { %22 = vsyncpa [#allocation3], 0 }
   0x5   :  { %24 = vsyncpa [#allocation3 + $0x1], 0  ;;  %s5574_s24 = smov 0   ;;  %s5576_s25 = smov 0  }
   0x6   :  { %s5578_s26 = smov 0   ;;  %s5580_s27 = smov 0  }
   0x7 LB: > { %6777 = sst [smem:[#allocation5_spill]] %s5466_s24  ;;  %s5595_s28 = sadd.s32 4294967295, %s5478_s27   ;;  %s5478_s27 = sphi %s5580_s27, %s6792_s27   ;;  %s5474_s26 = sphi %s5578_s26, %s6794_s26   ;;  %s5470_s25 = sphi %s5576_s25, %s6796_s25   ;;  %s5466_s24 = sphi %s5574_s24, %s6795_s24  }
   0x8   : > { %6778 = sst [smem:[#allocation6_spill]] %s5474_s26  ;;  %s4200_s29 = sadd.s32 4294967294, %s5478_s27  }
   0x9   : > { %6779 = sst [smem:[#allocation7_spill]] %s5478_s27  ;;  %s5599_s0 = sadd.s32 1, %s5478_s27  }
   0xa   : > { %6780 = sst [smem:[#allocation8_spill]] %s5599_s0  ;;  %s429_s30 = sadd.s32 1, %s5474_s26 }
   0xb   : > { %s426_s18 = ssub.s32 %s5478_s27, %s5599_s0  ;;  %p439_p0 = scmp.ne.s32.totalorder %s5474_s26, %s5470_s25 }
   0xc   : > { %p427_p1 = scmp.eq.s32.totalorder %s426_s18, 0  ;;  %p440_p2 = scmp.eq.s32.totalorder %s5595_s28, 1 }
   0xd   : > { %p445_p3 = scmp.ne.s32.totalorder %s5470_s25, %s5466_s24  ;;  %p446_p4 = scmp.eq.s32.totalorder %s4200_s29, 1 }
   0xe   : > { %s5610_s19 = scalar_select %p427_p1, %s5474_s26, %s429_s30  }
   0xf   : > { %p5612_p5 = por %p440_p2, %p439_p0  ;;  %p5616_p6 = por %p446_p4, %p445_p3 }
  0x10   : > { %6781 = sst [smem:[#allocation9_spill]] %s5610_s19  ;;  %p4203_p7 = scmp.ge.s32.totalorder %s5478_s27, 1 }
  0x11   : > { %s6783_s20 = scalar_select %p5616_p6, 1, 0 }
  0x12   : > { %p564_p8 = scmp.lt.s32.totalorder %s5478_s27, 3 }
  0x13   : > { %6784 = sst [smem:[#allocation10_spill]] %s6783_s20 }
  0x14   : > { %p565_p9 = pnand %p4203_p7, %p564_p8 }
  0x15   : > { %s6785_s8 = sld [smem:[#allocation13_spill]] (!%p565_p9)  ;;  %s4205_s23 = sshll.u32 (!%p565_p9), %s5595_s28, 4  ;;  %vm1120_vm0 = vcmask (!%p565_p9), 261120   ;;  %v5070_v8 = vld [vmem:[%s6756_s7 + $0x40] sm:$0xff] (!%p565_p9)   ;;  %v5074_v14 = vld [vmem:[%s6756_s7 + $0x48] sm:$0xff] (!%p565_p9)   ;;  %v5080_v20 = vld [vmem:[%s6756_s7 + $0x50] sm:$0xff] (!%p565_p9)  }
  0x16   : > { %568 = sbr.rel (%p565_p9) target bundleno = 892 (0x37c), region = 88  ;;  %p654_p10 = scmp.lt.s32.totalorder (!%p565_p9), %s4205_s23, 31  ;;  %v5071_v11 = vld [vmem:[%s6756_s7] sm:$0xff] (!%p565_p9)   ;;  %v5075_v15 = vld [vmem:[%s6756_s7 + $0x8] sm:$0xff] (!%p565_p9)   ;;  %v5081_v21 = vld [vmem:[%s6756_s7 + $0x10] sm:$0xff] (!%p565_p9)   ;;  %vm1755_vm1 = vcmask (!%p565_p9), 523264  }
  0x17   : > { %s6786_s24 = sld [smem:[#allocation12_spill]] (!%p565_p9)  ;;  %v5084_v24 = vld [vmem:[%s6756_s7 + $0x58] sm:$0xff] (!%p565_p9)   ;;  %v5090_v30 = vld [vmem:[%s6756_s7 + $0x60] sm:$0xff] (!%p565_p9)   ;;  %v5094_v34 = vld [vmem:[%s6756_s7 + $0x68] sm:$0xff] (!%p565_p9)   ;;  %s6787_s0 = sld [smem:[#allocation11_spill]] (!%p565_p9)  ;;  %vm2761_vm2 = vcmask (!%p565_p9), 130048  }
  0x18   : > { %v5085_v25 = vld [vmem:[%s6756_s7 + $0x18] sm:$0xff] (!%p565_p9)   ;;  %v5091_v31 = vld [vmem:[%s6756_s7 + $0x20] sm:$0xff] (!%p565_p9)   ;;  %v5095_v35 = vld [vmem:[%s6756_s7 + $0x28] sm:$0xff] (!%p565_p9)   ;;  %s4551_s22 = sshll.u32 (!%p565_p9), %s5595_s28, 11 }
  0x19   : > { %v5100_v39 = vld [vmem:[%s6756_s7 + $0xc0] sm:$0xff] (!%p565_p9)   ;;  %v5102_v41 = vld [vmem:[%s6756_s7 + $0x70] sm:$0xff] (!%p565_p9)   ;;  %v5105_v44 = vld [vmem:[%s6756_s7 + $0x78] sm:$0xff] (!%p565_p9)  }
  0x1a   : > { %v5103_v42 = vld [vmem:[%s6756_s7 + $0x80] sm:$0xff] (!%p565_p9)   ;;  %v5104_v43 = vld [vmem:[%s6756_s7 + $0x30] sm:$0xff] (!%p565_p9)   ;;  %v5106_v45 = vld [vmem:[%s6756_s7 + $0x38] sm:$0xff] (!%p565_p9)  }
  0x1b   : > { %v5060_v0 = vld [vmem:[%s6785_s8 + $0x40] sm:$0xff] (!%p565_p9)   ;;  %v5063_v3 = vld [vmem:[%s6785_s8 + $0x48] sm:$0xff] (!%p565_p9)   ;;  %v5066_v6 = vld [vmem:[%s6785_s8 + $0x50] sm:$0xff] (!%p565_p9)  }
  0x1c   : > { %v5061_v1 = vld [vmem:[%s6785_s8] sm:$0xff] (!%p565_p9)   ;;  %4552 = vmatprep.subr.bf16.mxu0 (!%p565_p9), %v5060_v0  ;;  %v5064_v4 = vld [vmem:[%s6785_s8 + $0x8] sm:$0xff] (!%p565_p9)   ;;  %v5068_v7 = vld [vmem:[%s6785_s8 + $0x10] sm:$0xff] (!%p565_p9)  }
  0x1d   : > { %v5062_v2 = vld [vmem:[%s6785_s8 + $0x80] sm:$0xff]   ;;  %4553 = vmatpush3.bf16.msra.mxu0 %v5061_v1  ;;  %s6798_s23 = smov (!%p654_p10, %s4205_s23), 31  ;;  %v5065_v5 = vld [vmem:[%s6785_s8 + $0x88] sm:$0xff]   ;;  %v5072_v12 = vld [vmem:[%s6785_s8 + $0x58] sm:$0xff]  }
  0x1e   : > { %4840 = vmatprep.subr.bf16.mxu1 %v5062_v2  ;;  %4554 = vmatprep.subr.bf16.mxu0 %v5063_v3  ;;  %s6773_s26 = smul.u32 12, %s6798_s23  ;;  %v5073_v13 = vld [vmem:[%s6785_s8 + $0x18] sm:$0xff]   ;;  %v5076_v16 = vld [vmem:[%s6785_s8 + $0x60] sm:$0xff]   ;;  %v5082_v22 = vld [vmem:[%s6785_s8 + $0x68] sm:$0xff]   ;;  %s5847_s20 = sshll.u32 %s6798_s23, 3 }
  0x1f   : > { %4841 = vmatpush3.bf16.msra.mxu1 %v5062_v2  ;;  %v5078_v18 = vld [vmem:[%s6785_s8 + $0x20] sm:$0xff]   ;;  %v5083_v23 = vld [vmem:[%s6785_s8 + $0x28] sm:$0xff]   ;;  %v5086_v26 = vld [vmem:[%s6785_s8 + $0x70] sm:$0xff]   ;;  %s5860_s21 = scalar_lea.vmem %s6752_s3, %s5847_s20  ;;  %s6788_s30 = smul.u32 12, %s6798_s23 }
  0x20   : > { %4842 = vmatprep.subr.bf16.mxu1 %v5065_v5  ;;  %s5655_s27 = scalar_lea.vmem %s6786_s24, %s6773_s26  ;;  %v5088_v28 = vld [vmem:[%s6785_s8 + $0x30] sm:$0xff]   ;;  %v5092_v32 = vld [vmem:[%s6785_s8 + $0x78] sm:$0xff]   ;;  %s5016_s24 = smul.u32 20, %s6798_s23  ;;  %v5113_v50 = vld [vmem:[%s6756_s7 + $0xc8] sm:$0xff]  }
  0x21   : > { %4555 = vmatpush3.bf16.msra.mxu0 %v5064_v4  ;;  %v5067_v9 = vld [vmem:[%s5655_s27 + $0x8] ss:$12 sps:$4 sm:$0xff]   ;;  %v5069_v10 = vld [vmem:[%s5655_s27 + $0x20] ss:$12 sps:$4 sm:$0xff]   ;;  %v5077_v17 = vld [vmem:[%s5655_s27 + $0x38] ss:$12 sps:$4 sm:$0xff]   ;;  %s5921_s18 = scalar_lea.vmem %s6751_s2, %s6788_s30  ;;  %s5986_s26 = scalar_lea.vmem %s6753_s4, %s5847_s20 }
  0x22   : > { %4556 = vmatprep.subr.bf16.mxu0 %v5066_v6  ;;  %4844 = vmatprep.mubr.msk.bf16.mxu1 %vm1120_vm0, %v5067_v9  ;;  %v5079_v19 = vld [vmem:[%s5655_s27 + $0x50] ss:$12 sps:$4 sm:$0xff]   ;;  %v5087_v27 = vld [vmem:[%s5655_s27 + $0x68] ss:$12 sps:$4 sm:$0xff]   ;;  %v5089_v29 = vld [vmem:[%s5655_s27 + $0x80] ss:$12 sps:$4 sm:$0xff]   ;;  %s6067_s23 = scalar_lea.vmem %s6754_s5, %s5847_s20  ;;  %s6073_s30 = scalar_lea.vmem %s6755_s6, %s5847_s20 }
  0x23   : > { %4843 = vmatpush3.bf16.msra.mxu1 %v5065_v5  ;;  %v5093_v33 = vld [vmem:[%s6785_s8 + $0x38] sm:$0xff]   ;;  %v5096_v36 = vld [vmem:[%s5655_s27] ss:$12 sps:$4 sm:$0xff]   ;;  %v5098_v37 = vld [vmem:[%s5655_s27 + $0x4] ss:$12 sps:$4 sm:$0xff]   ;;  %s5757_s8 = scalar_lea.vmem %s6787_s0, %s5016_s24  ;;  %s650_s24 = sand.u32 1, %s5470_s25  }
  0x24   : > { %4626 = vmatprep.subr.bf16.mxu1 %v5070_v8  ;;  %v5099_v38 = vld [vmem:[%s5655_s27 + $0x98] ss:$12 sps:$4 sm:$0xff]   ;;  %1177 = vmatprep.mubr.bf16.mxu0 %v5098_v37  ;;  %v5101_v40 = vld [vmem:[%s5655_s27 + $0xb0] ss:$12 sps:$4 sm:$0xff]   ;;  %v5110_v48 = vld [vmem:[%s5757_s8] ss:$20 sps:$4 sm:$0xff]  }
  0x25   : > { %4557 = vmatpush3.bf16.msra.mxu0 %v5068_v7  ;;  %v5107_v46 = vld [vmem:[%s5655_s27 + $0x1c] ss:$12 sps:$4 sm:$0xff]   ;;  %v5109_v47 = vld [vmem:[%s5655_s27 + $0x18] ss:$12 sps:$4 sm:$0xff]   ;;  %v5115_v52 = vld [vmem:[%s5655_s27 + $0x34] ss:$12 sps:$4 sm:$0xff]  }
  0x26   : > { %4845 = vmatmul.mubr.msk.bf16.vlgmr.msra.gmra.mrb[0].mxu1 %vm1120_vm0, %v5069_v10  ;;  %4558 = vmatprep.subr.bf16.mxu0 %v5072_v12  ;;  %v5112_v49 = vld [vmem:[%s5757_s8 + $0x4] ss:$20 sps:$4 sm:$0xff]   ;;  %v5114_v51 = vld [vmem:[%s6756_s7 + $0x88] sm:$0xff]   ;;  %v5117_v54 = vld [vmem:[%s5655_s27 + $0x30] ss:$12 sps:$4 sm:$0xff]   ;;  %s4204_s19 = sshll.u32 %s650_s24, 7 }
  0x27   : > { %4627 = vmatpush3.bf16.msra.mxu1 %v5071_v11  ;;  %4848 = vmatprep.mubr.msk.bf16.mxu1 %vm1120_vm0, %v5077_v17  ;;  %v5118_v53 = vld [vmem:[%s5757_s8 + $0x2c] ss:$20 sps:$4 sm:$0xff]   ;;  %v5120_v55 = vld [vmem:[%s6756_s7 + $0xd0] sm:$0xff]   ;;  %v5121_v57 = vld [vmem:[%s5757_s8 + $0x28] ss:$20 sps:$4 sm:$0xff]   ;;  %v5480_v17 = vmov 0  }
  0x28   : > { %4628 = vmatprep.subr.bf16.mxu1 %v5074_v14  ;;  %v5122_v56 = vld [vmem:[%s6756_s7 + $0x90] sm:$0xff]   ;;  %v5123_v58 = vld [vmem:[%s5655_s27 + $0x4c] ss:$12 sps:$4 sm:$0xff]   ;;  %v5136_v0 = vld [vmem:[%s6756_s7 + $0xe0] sm:$0xff]   ;;  %s6635_s0 = scalar_lea.vmem [#allocation2], %s4204_s19  ;;  %s6708_s28 = scalar_lea.sflag [#allocation3], %s650_s24 }
  0x29   : > { %4559 = vmatpush3.bf16.msra.mxu0 %v5073_v13  ;;  %v5126_v59 = vld [vmem:[%s5757_s8 + $0x54] ss:$20 sps:$4 sm:$0xff]   ;;  %v5128_v60 = vld [vmem:[%s6756_s7 + $0xd8] sm:$0xff]   ;;  %v5131_v63 = vld [vmem:[%s5655_s27 + $0x64] ss:$12 sps:$4 sm:$0xff]   ;;  %s4066_s29 = sshll.u32 %s6635_s0, 4  ;;  %s6701_s29 = int_to_ptr.vmem [resolvable:$true] %s4066_s29 }
  0x2a   : > { %4560 = vmatprep.subr.bf16.mxu0 %v5076_v16  ;;  %v5130_v61 = vld [vmem:[%s6756_s7 + $0x98] sm:$0xff]   ;;  %v5125_v62 = vld [vmem:[%s5655_s27 + $0x48] ss:$12 sps:$4 sm:$0xff]   ;;  %v5138_v1 = vld [vmem:[%s6756_s7 + $0xa0] sm:$0xff]  }
  0x2b   : > { %4629 = vmatpush3.bf16.msra.mxu1 %v5075_v15  ;;  %v5129_v2 = vld [vmem:[%s5757_s8 + $0x50] ss:$20 sps:$4 sm:$0xff]   ;;  %v5144_v4 = vld [vmem:[%s6756_s7 + $0xe8] sm:$0xff]   ;;  %v5160_v13 = vld [vmem:[%s6756_s7 + $0xf8] sm:$0xff]  }
  0x2c   : > { %4630 = vmatprep.subr.bf16.mxu1 %v5080_v20  ;;  %v5134_v3 = vld [vmem:[%s5757_s8 + $0x7c] ss:$20 sps:$4 sm:$0xff]   ;;  %v5146_v5 = vld [vmem:[%s6756_s7 + $0xa8] sm:$0xff]   ;;  %v5142_v10 = vld [vmem:[%s5757_s8 + $0xa4] ss:$20 sps:$4 sm:$0xff]  }
  0x2d   : > { %4561 = vmatpush3.bf16.msra.mxu0 %v5078_v18  ;;  %v5133_v6 = vld [vmem:[%s5655_s27 + $0x60] ss:$12 sps:$4 sm:$0xff]   ;;  %v5139_v8 = vld [vmem:[%s5655_s27 + $0x7c] ss:$12 sps:$4 sm:$0xff]   ;;  %v5152_v9 = vld [vmem:[%s6756_s7 + $0xf0] sm:$0xff]  }
  0x2e   : > { %4849 = vmatmul.mubr.msk.bf16.gmra.mrb[4].mxu1 %vm1120_vm0, %v5079_v19  ;;  %4562 = vmatprep.subr.bf16.mxu0 %v5082_v22  ;;  %v5137_v7 = vld [vmem:[%s5757_s8 + $0x78] ss:$20 sps:$4 sm:$0xff]   ;;  %v5154_v11 = vld [vmem:[%s6756_s7 + $0xb0] sm:$0xff]   ;;  %v5153_v22 = vld [vmem:[%s5757_s8 + $0xc8] ss:$20 sps:$4 sm:$0xff]  }
  0x2f   : > { %4631 = vmatpush3.bf16.msra.mxu1 %v5081_v21  ;;  %4852 = vmatprep.mubr.msk.bf16.mxu1 %vm1120_vm0, %v5087_v27  ;;  %v5141_v12 = vld [vmem:[%s5655_s27 + $0x78] ss:$12 sps:$4 sm:$0xff]   ;;  %v5147_v15 = vld [vmem:[%s5655_s27 + $0x94] ss:$12 sps:$4 sm:$0xff]   ;;  %v5149_v19 = vld [vmem:[%s5655_s27 + $0x90] ss:$12 sps:$4 sm:$0xff]  }
  0x30   : > { %4632 = vmatprep.subr.bf16.mxu1 %v5084_v24  ;;  %v5162_v14 = vld [vmem:[%s6756_s7 + $0xb8] sm:$0xff]   ;;  %v5145_v16 = vld [vmem:[%s5757_s8 + $0xa0] ss:$20 sps:$4 sm:$0xff]   ;;  %v5174_v37 = vld [vmem:[%s5757_s8 + $0xd0] ss:$20 sps:$4 sm:$0xff]  }
  0x31   : > { %4563 = vmatpush3.bf16.msra.mxu0 %v5083_v23  ;;  %v5150_v18 = vld [vmem:[%s5757_s8 + $0xcc] ss:$20 sps:$4 sm:$0xff]   ;;  %v5158_v23 = vld [vmem:[%s5757_s8 + $0xf4] ss:$20 sps:$4 sm:$0xff]   ;;  %v5166_v27 = vld [vmem:[%s5757_s8 + $0x11c] ss:$20 sps:$4 sm:$0xff]  }
  0x32   : > { %4564 = vmatprep.subr.bf16.mxu0 %v5086_v26  ;;  %v5155_v20 = vld [vmem:[%s5655_s27 + $0xac] ss:$12 sps:$4 sm:$0xff]   ;;  %v5178_v21 = vld [vmem:[%s6756_s7 + $0x100] sm:$0xff]   ;;  %v5157_v24 = vld [vmem:[%s5655_s27 + $0xa8] ss:$12 sps:$4 sm:$0xff]  }
  0x33   : > { %4633 = vmatpush3.bf16.msra.mxu1 %v5085_v25  ;;  %v5165_v25 = vld [vmem:[%s5757_s8 + $0xc] ss:$20 sps:$4 sm:$0xff]   ;;  %v5161_v26 = vld [vmem:[%s5757_s8 + $0xf0] ss:$20 sps:$4 sm:$0xff]  }
  0x34   : > { %4634 = vmatprep.subr.bf16.mxu1 %v5090_v30  ;;  %v5171_v30 = vld [vmem:[%s5757_s8 + $0x34] ss:$20 sps:$4 sm:$0xff]  }
  0x35   : > { %4565 = vmatpush3.bf16.msra.mxu0 %v5088_v28  ;;  %v5163_v28 = vld [vmem:[%s5757_s8 + $0x8] ss:$20 sps:$4 sm:$0xff]  }
  0x36   : > { %4853 = vmatmul.mubr.msk.bf16.gmra.mrb[8].mxu1 %vm1120_vm0, %v5089_v29  ;;  %4566 = vmatprep.subr.bf16.mxu0 %v5092_v32  ;;  %v5169_v29 = vld [vmem:[%s6759_s10] sm:$0xff]   ;;  %v5176_v32 = vld [vmem:[%s5757_s8 + $0xd4] ss:$20 sps:$4 sm:$0xff]  }
  0x37   : > { %4635 = vmatpush3.bf16.msra.mxu1 %v5091_v31  ;;  %4856 = vmatprep.mubr.msk.bf16.mxu1 %vm1120_vm0, %v5099_v38  ;;  %v5168_v31 = vld [vmem:[%s5757_s8 + $0x118] ss:$20 sps:$4 sm:$0xff]  }
  0x38   : > { %4636 = vmatprep.subr.bf16.mxu1 %v5094_v34  ;;  %v5173_v34 = vld [vmem:[%s5757_s8 + $0x30] ss:$20 sps:$4 sm:$0xff]   ;;  %v5181_v38 = vld [vmem:[%s6759_s10 + $0x18] sm:$0xff]  }
  0x39   : > { %4567 = vmatpush3.bf16.msra.mxu0 %v5093_v33  ;;  %v5170_v33 = vld [vmem:[%s6759_s10 + $0x8] sm:$0xff]  }
  0x3a   : > { %4690 = vmatprep.subr.bf16.mxu0 %v5100_v39 }
  0x3b   : > { %4637 = vmatpush3.bf16.msra.mxu1 %v5095_v35  ;;  %v5177_v35 = vld [vmem:[%s6759_s10 + $0x10] sm:$0xff]  }
  0x3c   : > { %1178 = vmatmul.mubr.bf16.vlgmr.msra.gmra.mrb[0].mxu0 %v5096_v36  ;;  %4638 = vmatprep.subr.bf16.mxu1 %v5102_v41  ;;  %v5179_v36 = vld [vmem:[%s5757_s8 + $0x5c] ss:$20 sps:$4 sm:$0xff]   ;;  %v5182_v41 = vld [vmem:[%s5757_s8 + $0x58] ss:$20 sps:$4 sm:$0xff]  }
  0x3d   : > { %4691 = vmatpush3.bf16.msra.mxu0 %v5103_v42  ;;  %1185 = vmatprep.mubr.bf16.mxu0 %v5107_v46  ;;  %v5192_v46 = vld [vmem:[%s5757_s8 + $0x124] ss:$20 sps:$4 sm:$0xff]  }
  0x3e   : > { %4857 = vmatmul.mubr.msk.bf16.gmra.mrb[12].mxu1 %vm1120_vm0, %v5101_v40  ;;  %4692 = vmatprep.subr.bf16.mxu0 %v5113_v50  ;;  %v5186_v40 = vld [vmem:[%s6756_s7 + $0x108] sm:$0xff]  }
  0x3f   : > { %4639 = vmatpush3.bf16.msra.mxu1 %v5104_v43  ;;  %1812 = vmatprep.mubr.bf16.mxu1 %v5112_v49  ;;  %v5188_v43 = vld [vmem:[%s5757_s8 + $0x84] ss:$20 sps:$4 sm:$0xff]   ;;  %v5191_v49 = vld [vmem:[%s5757_s8 + $0x80] ss:$20 sps:$4 sm:$0xff]  }
  0x40   : > { %4640 = vmatprep.subr.bf16.mxu1 %v5105_v44  ;;  %v5185_v44 = vld [vmem:[%s5757_s8 + $0xf8] ss:$20 sps:$4 sm:$0xff]  }
  0x41   : > { %4693 = vmatpush3.bf16.msra.mxu0 %v5114_v51 }
  0x42   : > { %4694 = vmatprep.subr.bf16.mxu0 %v5120_v55 }
  0x43   : > { %4641 = vmatpush3.bf16.msra.mxu1 %v5106_v45  ;;  %v5190_v45 = vld [vmem:[%s6756_s7 + $0x110] sm:$0xff]  }
  0x44   : > { %1186 = vmatmul.mubr.bf16.gmra.mrb[4].mxu0 %v5109_v47  ;;  %4904 = vmatprep.subr.bf16.mxu1 %v5100_v39  ;;  %v5183_v39 = vld [vmem:[%s5757_s8 + $0xfc] ss:$20 sps:$4 sm:$0xff]   ;;  %v5194_v47 = vld [vmem:[%s6759_s10 + $0x28] sm:$0xff]  }
  0x45   : > { %1193 = vmatprep.mubr.bf16.mxu0 %v5115_v52  ;;  %4695 = vmatpush3.bf16.msra.mxu0 %v5122_v56  ;;  %v5203_v52 = vld [vmem:[%s6758_s9 + $0x40] sm:$0xff]  }
  0x46   : > { %1813 = vmatmul.mubr.bf16.vlgmr.msra.gmra.mrb[16].mxu1 %v5110_v48  ;;  %4696 = vmatprep.subr.bf16.mxu0 %v5128_v60  ;;  %v5197_v48 = vld [vmem:[%s6756_s7 + $0x118] sm:$0xff]  }
  0x47   : > { %4912 = vmatpush3.bf16.msra.mxu1 %v5103_v42  ;;  %1820 = vmatprep.mubr.bf16.mxu1 %v5118_v53  ;;  %v5187_v42 = vld [vmem:[%s6759_s10 + $0x20] sm:$0xff]  }
  0x48   : > { %4905 = vmatprep.subr.bf16.mxu1 %v5113_v50  ;;  %v5196_v50 = vld [vmem:[%s6759_s10 + $0x30] sm:$0xff]  }
  0x49   : > { %4697 = vmatpush3.bf16.msra.mxu0 %v5130_v61  ;;  %v5195_v53 = vld [vmem:[%s5757_s8 + $0x120] ss:$20 sps:$4 sm:$0xff]  }
  0x4a   : > { %4698 = vmatprep.subr.bf16.mxu0 %v5136_v0 }
  0x4b   : > { %4913 = vmatpush3.bf16.msra.mxu1 %v5114_v51  ;;  %v5198_v51 = vld [vmem:[%s5757_s8 + $0xac] ss:$20 sps:$4 sm:$0xff]  }
  0x4c   : > { %1194 = vmatmul.mubr.bf16.gmra.mrb[8].mxu0 %v5117_v54  ;;  %4906 = vmatprep.subr.bf16.mxu1 %v5120_v55  ;;  %v5201_v54 = vld [vmem:[%s5757_s8 + $0x10] ss:$20 sps:$4 sm:$0xff]   ;;  %v5204_v55 = vld [vmem:[%s6759_s10 + $0x38] sm:$0xff]  }
  0x4d   : > { %1201 = vmatprep.mubr.bf16.mxu0 %v5123_v58  ;;  %4699 = vmatpush3.bf16.msra.mxu0 %v5138_v1  ;;  %v5211_v58 = vld [vmem:[%s5860_s21 + $0x4] ss:$8 sps:$4 sm:$0xff]  }
  0x4e   : > { %1821 = vmatmul.mubr.bf16.gmra.mrb[20].mxu1 %v5121_v57  ;;  %4700 = vmatprep.subr.bf16.mxu0 %v5144_v4  ;;  %v5207_v57 = vld [vmem:[%s6759_s10 + $0x40] sm:$0xff]  }
  0x4f   : > { %1828 = vmatprep.mubr.bf16.mxu1 %v5126_v59  ;;  %4914 = vmatpush3.bf16.msra.mxu1 %v5122_v56  ;;  %v5200_v56 = vld [vmem:[%s5757_s8 + $0xa8] ss:$20 sps:$4 sm:$0xff]   ;;  %v5202_v59 = vld [vmem:[%s5757_s8 + $0x38] ss:$20 sps:$4 sm:$0xff]  }
  0x50   : > { %4907 = vmatprep.subr.bf16.mxu1 %v5128_v60  ;;  %v5205_v60 = vld [vmem:[%s6758_s9] sm:$0xff]  }
  0x51   : > { %4701 = vmatpush3.bf16.msra.mxu0 %v5146_v5 }
  0x52   : > { %4702 = vmatprep.subr.bf16.mxu0 %v5152_v9 }
  0x53   : > { %4915 = vmatpush3.bf16.msra.mxu1 %v5130_v61  ;;  %v5212_v61 = vld [vmem:[%s5757_s8 + $0x60] ss:$20 sps:$4 sm:$0xff]  }
  0x54   : > { %1202 = vmatmul.mubr.bf16.gmra.mrb[12].mxu0 %v5125_v62  ;;  %4908 = vmatprep.subr.bf16.mxu1 %v5136_v0  ;;  %v5206_v62 = vld [vmem:[%s6758_s9 + $0x48] sm:$0xff]  }
  0x55   : > { %1209 = vmatprep.mubr.bf16.mxu0 %v5131_v63  ;;  %4703 = vmatpush3.bf16.msra.mxu0 %v5154_v11  ;;  %v5208_v63 = vld [vmem:[%s6758_s9 + $0x8] sm:$0xff]  }
  0x56   : > { %1829 = vmatmul.mubr.bf16.gmra.mrb[24].mxu1 %v5129_v2  ;;  %4704 = vmatprep.subr.bf16.mxu0 %v5160_v13  ;;  %v5209_v0 = vld [vmem:[%s5860_s21] ss:$8 sps:$4 sm:$0xff]  }
  0x57   : > { %1836 = vmatprep.mubr.bf16.mxu1 %v5134_v3  ;;  %4916 = vmatpush3.bf16.msra.mxu1 %v5138_v1  ;;  %v5214_v1 = vld [vmem:[%s6758_s9 + $0x50] sm:$0xff]   ;;  %v5215_v2 = vld [vmem:[%s6760_s11] sm:$0xff]  }
  0x58   : > { %4909 = vmatprep.subr.bf16.mxu1 %v5144_v4  ;;  %v5219_v3 = vld [vmem:[%s5860_s21 + $0x14] ss:$8 sps:$4 sm:$0xff]  }
  0x59   : > { %4705 = vmatpush3.bf16.msra.mxu0 %v5162_v14  ;;  %v5213_v4 = vld [vmem:[%s5757_s8 + $0x88] ss:$20 sps:$4 sm:$0xff]  }
  0x5a   : > { %2786 = vmatprep.subr.bf16.mxu0 %v5480_v17 }
  0x5b   : > { %4917 = vmatpush3.bf16.msra.mxu1 %v5146_v5  ;;  %v5216_v5 = vld [vmem:[%s6758_s9 + $0x10] sm:$0xff]  }
  0x5c   : > { %1210 = vmatmul.mubr.bf16.gmra.mrb[16].mxu0 %v5133_v6  ;;  %4910 = vmatprep.subr.bf16.mxu1 %v5152_v9  ;;  %v5217_v6 = vld [vmem:[%s6758_s9 + $0x58] sm:$0xff]  }
  0x5d   : > { %1217 = vmatprep.mubr.bf16.mxu0 %v5139_v8  ;;  %v5225_v8 = vld [vmem:[%s6760_s11 + $0x8] sm:$0xff]   ;;  %v5218_v9 = vld [vmem:[%s6758_s9 + $0x18] sm:$0xff]  }
  0x5e   : > { %1837 = vmatmul.mubr.bf16.gmra.mrb[28].mxu1 %v5137_v7  ;;  %v5221_v7 = vld [vmem:[%s5757_s8 + $0xb0] ss:$20 sps:$4 sm:$0xff]  }
  0x5f   : > { %1844 = vmatprep.mubr.bf16.mxu1 %v5142_v10  ;;  %4918 = vmatpush3.bf16.msra.mxu1 %v5154_v11  ;;  %v5222_v10 = vld [vmem:[%s5860_s21 + $0x10] ss:$8 sps:$4 sm:$0xff]   ;;  %v5224_v11 = vld [vmem:[%s6758_s9 + $0x60] sm:$0xff]  }
  0x60   : > { %4911 = vmatprep.subr.bf16.mxu1 %v5160_v13  ;;  %v5233_v13 = vld [vmem:[%s6760_s11 + $0x10] sm:$0xff]  }
  0x63   : > { %4919 = vmatpush3.bf16.msra.mxu1 %v5162_v14  ;;  %v5223_v14 = vld [vmem:[%s5757_s8 + $0xd8] ss:$20 sps:$4 sm:$0xff]  }
  0x64   : > { %1218 = vmatmul.mubr.bf16.gmra.mrb[20].mxu0 %v5141_v12  ;;  %4860 = vmatprep.subr.bf16.mxu1 %v5178_v21  ;;  %v5229_v12 = vld [vmem:[%s5860_s21 + $0x24] ss:$8 sps:$4 sm:$0xff]  }
  0x65   : > { %1225 = vmatprep.mubr.bf16.mxu0 %v5147_v15  ;;  %v5226_v15 = vld [vmem:[%s6758_s9 + $0x20] sm:$0xff]  }
  0x66   : > { %1845 = vmatmul.mubr.bf16.gmra.mrb[32].mxu1 %v5145_v16  ;;  %v5231_v16 = vld [vmem:[%s5757_s8 + $0x100] ss:$20 sps:$4 sm:$0xff]  }
  0x67   : > { %1852 = vmatprep.mubr.bf16.mxu1 %v5150_v18  ;;  %v5227_v18 = vld [vmem:[%s6758_s9 + $0x68] sm:$0xff]  }
  0x6c   : > { %1226 = vmatmul.mubr.bf16.gmra.mrb[24].mxu0 %v5149_v19  ;;  %v5241_v19 = vld [vmem:[%s6760_s11 + $0x18] sm:$0xff]  }
  0x6d   : > { %1233 = vmatprep.mubr.bf16.mxu0 %v5155_v20  ;;  %v5228_v20 = vld [vmem:[%s6758_s9 + $0x28] sm:$0xff]  }
  0x6e   : > { %1853 = vmatmul.mubr.bf16.gmra.mrb[36].mxu1 %v5153_v22  ;;  %v5235_v22 = vld [vmem:[%s6758_s9 + $0x70] sm:$0xff]  }
  0x6f   : > { %1860 = vmatprep.mubr.bf16.mxu1 %v5158_v23  ;;  %v5239_v23 = vld [vmem:[%s5860_s21 + $0x34] ss:$8 sps:$4 sm:$0xff]  }
  0x74   : > { %1234 = vmatmul.mubr.bf16.gmra.mrb[28].mxu0 %v5157_v24  ;;  %v5247_v24 = vld [vmem:[%s6760_s11 + $0x20] sm:$0xff]  }
  0x75   : > { %1909 = vmatprep.mubr.bf16.mxu0 %v5165_v25  ;;  %v5234_v25 = vld [vmem:[%s5757_s8 + $0x128] ss:$20 sps:$4 sm:$0xff]   ;;  %s5481_s8 = smov [#allocation2]  }
  0x76   : > { %1861 = vmatmul.mubr.bf16.gmra.mrb[40].mxu1 %v5161_v26  ;;  %v5236_v26 = vld [vmem:[%s6758_s9 + $0x30] sm:$0xff]   ;;  %s5420_s27 = sshll.u32 %s5481_s8, 4  ;;  %s5421_s27 = int_to_ptr.vmem [resolvable:$false] %s5420_s27 }
  0x77   : > { %1868 = vmatprep.mubr.bf16.mxu1 %v5166_v27  ;;  %v5244_v27 = vld [vmem:[%s5921_s18 + $0x4] ss:$12 sps:$4 sm:$0xff]   ;;  %s5422_s19 = scalar_lea.vmem %s5421_s27, 4096  ;;  %p5423_p0 = scmp.lt.s32.totalorder %s6701_s29, %s5421_s27 }
  0x7c   : > { %1910 = vmatmul.mubr.bf16.vlgmr.msra.gmra.mrb[32].mxu0 %v5163_v28  ;;  %v5237_v28 = vld [vmem:[%s6758_s9 + $0x78] sm:$0xff]  }
  0x7d   : > { %2787 = vmatpush1.bf16.msra.mxu0 %v5169_v29  ;;  %1917 = vmatprep.mubr.bf16.mxu0 %v5171_v30  ;;  %v5254_v29 = vld [vmem:[%s6760_s11 + $0x28] sm:$0xff]   ;;  %v5238_v30 = vld [vmem:[%s6758_s9 + $0x38] sm:$0xff]  }
  0x7e   : > { %2788 = vmatprep.subr.bf16.mxu0 %v5480_v17  ;;  %1869 = vmatmul.mubr.bf16.gmra.mrb[44].mxu1 %v5168_v31  ;;  %v5245_v31 = vld [vmem:[%s5860_s21 + $0x30] ss:$8 sps:$4 sm:$0xff]  }
  0x7f   : > { %1949 = vmatprep.mubr.bf16.mxu1 %v5176_v32  ;;  %v5246_v32 = vld [vmem:[%s6758_s9 + $0x80] sm:$0xff]  }
  0x81   : > { %2789 = vmatpush1.bf16.msra.mxu0 %v5170_v33  ;;  %v5248_v33 = vld [vmem:[%s5860_s21 + $0x44] ss:$8 sps:$4 sm:$0xff]  }
  0x82   : > { %2790 = vmatprep.subr.bf16.mxu0 %v5480_v17 }
  0x84   : > { %1918 = vmatmul.mubr.bf16.gmra.mrb[36].mxu0 %v5173_v34  ;;  %v5261_v34 = vld [vmem:[%s6760_s11 + $0x30] sm:$0xff]  }
  0x85   : > { %2791 = vmatpush1.bf16.msra.mxu0 %v5177_v35  ;;  %1925 = vmatprep.mubr.bf16.mxu0 %v5179_v36  ;;  %v5242_v35 = vld [vmem:[%s5921_s18] ss:$12 sps:$4 sm:$0xff]   ;;  %v5250_v36 = vld [vmem:[%s5921_s18 + $0x1c] ss:$12 sps:$4 sm:$0xff]  }
  0x86   : > { %2792 = vmatprep.subr.bf16.mxu0 %v5480_v17  ;;  %1950 = vmatmul.mubr.bf16.vlgmr.msra.gmra.mrb[48].mxu1 %v5174_v37  ;;  %v5276_v37 = vld [vmem:[%s6758_s9 + $0x88] sm:$0xff]  }
  0x87   : > { %4861 = vmatpush3.bf16.msra.mxu1 %v5178_v21  ;;  %1957 = vmatprep.mubr.bf16.mxu1 %v5183_v39  ;;  %v5232_v21 = vld [vmem:[%s5860_s21 + $0x20] ss:$8 sps:$4 sm:$0xff]  }
  0x88   : > { %4862 = vmatprep.subr.bf16.mxu1 %v5186_v40  ;;  %v5252_v39 = vld [vmem:[%s5860_s21 + $0x40] ss:$8 sps:$4 sm:$0xff]  }
  0x89   : > { %2793 = vmatpush1.bf16.msra.mxu0 %v5181_v38  ;;  %v5268_v38 = vld [vmem:[%s6760_s11 + $0x38] sm:$0xff]  }
  0x8a   : > { %2794 = vmatprep.subr.bf16.mxu0 %v5480_v17 }
  0x8b   : > { %4863 = vmatpush3.bf16.msra.mxu1 %v5186_v40  ;;  %v5255_v40 = vld [vmem:[%s5860_s21 + $0x54] ss:$8 sps:$4 sm:$0xff]  }
  0x8c   : > { %1926 = vmatmul.mubr.bf16.gmra.mrb[40].mxu0 %v5182_v41  ;;  %4864 = vmatprep.subr.bf16.mxu1 %v5190_v45  ;;  %v5275_v41 = vld [vmem:[%s6760_s11 + $0x40] sm:$0xff]  }
  0x8d   : > { %2795 = vmatpush1.bf16.msra.mxu0 %v5187_v42  ;;  %1933 = vmatprep.mubr.bf16.mxu0 %v5188_v43  ;;  %v5253_v42 = vld [vmem:[%s5921_s18 + $0x18] ss:$12 sps:$4 sm:$0xff]   ;;  %v5257_v43 = vld [vmem:[%s5921_s18 + $0x34] ss:$12 sps:$4 sm:$0xff]  }
  0x8e   : > { %2796 = vmatprep.subr.bf16.mxu0 %v5480_v17  ;;  %1958 = vmatmul.mubr.bf16.gmra.mrb[52].mxu1 %v5185_v44  ;;  %v5259_v44 = vld [vmem:[%s5860_s21 + $0x50] ss:$8 sps:$4 sm:$0xff]  }
  0x8f   : > { %1965 = vmatprep.mubr.bf16.mxu1 %v5192_v46  ;;  %4865 = vmatpush3.bf16.msra.mxu1 %v5190_v45  ;;  %v5262_v45 = vld [vmem:[%s5860_s21 + $0x64] ss:$8 sps:$4 sm:$0xff]   ;;  %v5260_v46 = vld [vmem:[%s5921_s18 + $0x30] ss:$12 sps:$4 sm:$0xff]  }
  0x90   : > { %4866 = vmatprep.subr.bf16.mxu1 %v5197_v48 }
  0x91   : > { %2797 = vmatpush1.bf16.msra.mxu0 %v5194_v47  ;;  %v5264_v47 = vld [vmem:[%s5921_s18 + $0x4c] ss:$12 sps:$4 sm:$0xff]  }
  0x92   : > { %2798 = vmatprep.subr.bf16.mxu0 %v5480_v17 }
  0x93   : > { %4867 = vmatpush3.bf16.msra.mxu1 %v5197_v48  ;;  %v5266_v48 = vld [vmem:[%s5860_s21 + $0x60] ss:$8 sps:$4 sm:$0xff]  }
  0x94   : > { %1934 = vmatmul.mubr.bf16.gmra.mrb[44].mxu0 %v5191_v49  ;;  %4766 = vmatprep.subr.bf16.mxu1 %v5203_v52  ;;  %v5269_v49 = vld [vmem:[%s5860_s21 + $0x74] ss:$8 sps:$4 sm:$0xff]   ;;  %v5273_v52 = vld [vmem:[%s5860_s21 + $0x70] ss:$8 sps:$4 sm:$0xff]  }
  0x95   : > { %2799 = vmatpush1.bf16.msra.mxu0 %v5196_v50  ;;  %1941 = vmatprep.mubr.bf16.mxu0 %v5198_v51  ;;  %v5267_v50 = vld [vmem:[%s5921_s18 + $0x48] ss:$12 sps:$4 sm:$0xff]   ;;  %v5271_v51 = vld [vmem:[%s5921_s18 + $0x64] ss:$12 sps:$4 sm:$0xff]  }
  0x96   : > { %2800 = vmatprep.subr.bf16.mxu0 %v5480_v17  ;;  %1966 = vmatmul.mubr.bf16.gmra.mrb[56].mxu1 %v5195_v53  ;;  %v5279_v53 = vld [vmem:[%s5986_s26 + $0x4] ss:$8 sps:$4 sm:$0xff]  }
  0x97   : > { %4868 = vmatprep.mubr.msk.bf16.mxu1 %vm1755_vm1, %v5201_v54  ;;  %v5274_v54 = vld [vmem:[%s5921_s18 + $0x60] ss:$12 sps:$4 sm:$0xff]  }
  0x99   : > { %2801 = vmatpush1.bf16.msra.mxu0 %v5204_v55  ;;  %v5280_v55 = vld [vmem:[%s5921_s18 + $0x7c] ss:$12 sps:$4 sm:$0xff]  }
  0x9a   : > { %2802 = vmatprep.subr.bf16.mxu0 %v5480_v17 }
  0x9c   : > { %1942 = vmatmul.mubr.bf16.gmra.mrb[48].mxu0 %v5200_v56  ;;  %v5277_v56 = vld [vmem:[%s5986_s26] ss:$8 sps:$4 sm:$0xff]  }
  0x9d   : > { %2803 = vmatpush1.bf16.msra.mxu0 %v5207_v57  ;;  %4432 = vmatprep.mubr.msk.bf16.mxu0 %vm2761_vm2, %v5211_v58  ;;  %v5283_v57 = vld [vmem:[%s6762_s13] sm:$0xff]   ;;  %v5284_v58 = vld [vmem:[%s5986_s26 + $0x14] ss:$8 sps:$4 sm:$0xff]  }
  0x9e   : > { %3083 = vmatprep.subr.bf16.mxu0 %v5480_v17  ;;  %4869 = vmatmul.mubr.msk.bf16.vlgmr.msra.gmra.mrb[0].mxu1 %vm1755_vm1, %v5202_v59  ;;  %v5282_v59 = vld [vmem:[%s5921_s18 + $0x78] ss:$12 sps:$4 sm:$0xff]  }
  0x9f   : > { %4767 = vmatpush3.bf16.msra.mxu1 %v5205_v60  ;;  %4872 = vmatprep.mubr.msk.bf16.mxu1 %vm1755_vm1, %v5212_v61  ;;  %v5286_v60 = vld [vmem:[%s5921_s18 + $0x94] ss:$12 sps:$4 sm:$0xff]   ;;  %v5290_v61 = vld [vmem:[%s6762_s13 + $0x8] sm:$0xff]  }
  0xa0   : > { %4768 = vmatprep.subr.bf16.mxu1 %v5206_v62  ;;  %v5288_v62 = vld [vmem:[%s5986_s26 + $0x10] ss:$8 sps:$4 sm:$0xff]  }
  0xa3   : > { %4769 = vmatpush3.bf16.msra.mxu1 %v5208_v63  ;;  %v5291_v63 = vld [vmem:[%s5986_s26 + $0x24] ss:$8 sps:$4 sm:$0xff]  }
  0xa4   : > { %2819 = vmatmul.mubr.bf16.vlgmr.msra.gmra.mrb[52].mxu0 %v5209_v0  ;;  %4770 = vmatprep.subr.bf16.mxu1 %v5214_v1  ;;  %v5296_v0 = vld [vmem:[%s6762_s13 + $0x10] sm:$0xff]  }
  0xa5   : > { %3084 = vmatpush1.bf16.msra.mxu0 %v5215_v2  ;;  %4433 = vmatprep.mubr.msk.bf16.mxu0 %vm2761_vm2, %v5219_v3  ;;  %v5289_v1 = vld [vmem:[%s5921_s18 + $0x90] ss:$12 sps:$4 sm:$0xff]   ;;  %v5293_v2 = vld [vmem:[%s5921_s18 + $0xac] ss:$12 sps:$4 sm:$0xff]  }
  0xa6   : > { %3085 = vmatprep.subr.bf16.mxu0 %v5480_v17  ;;  %4873 = vmatmul.mubr.msk.bf16.gmra.mrb[4].mxu1 %vm1755_vm1, %v5213_v4  ;;  %v5300_v3 = vld [vmem:[%s6762_s13 + $0x18] sm:$0xff]   ;;  %v5295_v4 = vld [vmem:[%s5986_s26 + $0x20] ss:$8 sps:$4 sm:$0xff]  }
  0xa7   : > { %4771 = vmatpush3.bf16.msra.mxu1 %v5216_v5  ;;  %4876 = vmatprep.mubr.msk.bf16.mxu1 %vm1755_vm1, %v5221_v7  ;;  %v5298_v5 = vld [vmem:[%s5986_s26 + $0x34] ss:$8 sps:$4 sm:$0xff]  }
  0xa8   : > { %4772 = vmatprep.subr.bf16.mxu1 %v5217_v6  ;;  %v5306_v6 = vld [vmem:[%s6762_s13 + $0x20] sm:$0xff]   ;;  %v5297_v7 = vld [vmem:[%s5921_s18 + $0xa8] ss:$12 sps:$4 sm:$0xff]  }
  0xa9   : > { %3086 = vmatpush1.bf16.msra.mxu0 %v5225_v8  ;;  %v5301_v8 = vld [vmem:[%s5921_s18 + $0x8] ss:$12 sps:$4 sm:$0xff]  }
  0xaa   : > { %3087 = vmatprep.subr.bf16.mxu0 %v5480_v17 }
  0xab   : > { %4773 = vmatpush3.bf16.msra.mxu1 %v5218_v9  ;;  %v5314_v9 = vld [vmem:[%s6762_s13 + $0x28] sm:$0xff]  }
  0xac   : > { %2827 = vmatmul.mubr.bf16.gmra.mrb[56].mxu0 %v5222_v10  ;;  %4774 = vmatprep.subr.bf16.mxu1 %v5224_v11  ;;  %v5302_v10 = vld [vmem:[%s5986_s26 + $0x30] ss:$8 sps:$4 sm:$0xff]   ;;  %v5307_v11 = vld [vmem:[%s5986_s26 + $0x44] ss:$8 sps:$4 sm:$0xff]  }
  0xad   : > { %4434 = vmatprep.mubr.msk.bf16.mxu0 %vm2761_vm2, %v5229_v12  ;;  %3088 = vmatpush1.bf16.msra.mxu0 %v5233_v13  ;;  %v5321_v12 = vld [vmem:[%s6762_s13 + $0x30] sm:$0xff]   ;;  %v5303_v13 = vld [vmem:[%s5921_s18 + $0x20] ss:$12 sps:$4 sm:$0xff]  }
  0xae   : > { %4877 = vmatmul.mubr.msk.bf16.gmra.mrb[8].mxu1 %vm1755_vm1, %v5223_v14  ;;  %3089 = vmatprep.subr.bf16.mxu0 %v5480_v17  ;;  %v5304_v14 = vld [vmem:[%s6761_s12] sm:$0xff]  }
  0xaf   : > { %4775 = vmatpush3.bf16.msra.mxu1 %v5226_v15  ;;  %4880 = vmatprep.mubr.msk.bf16.mxu1 %vm1755_vm1, %v5231_v16  ;;  %v5309_v15 = vld [vmem:[%s5921_s18 + $0x38] ss:$12 sps:$4 sm:$0xff]  }
  0xb0   : > { %4776 = vmatprep.subr.bf16.mxu1 %v5227_v18  ;;  %v5329_v16 = vld [vmem:[%s6762_s13 + $0x38] sm:$0xff]   ;;  %v5305_v18 = vld [vmem:[%s6761_s12 + $0x8] sm:$0xff]  }
  0xb1   : > { %3090 = vmatpush1.bf16.msra.mxu0 %v5241_v19  ;;  %v5310_v19 = vld [vmem:[%s5986_s26 + $0x40] ss:$8 sps:$4 sm:$0xff]  }
  0xb2   : > { %3091 = vmatprep.subr.bf16.mxu0 %v5480_v17 }
  0xb3   : > { %4777 = vmatpush3.bf16.msra.mxu1 %v5228_v20  ;;  %v5315_v20 = vld [vmem:[%s5986_s26 + $0x54] ss:$8 sps:$4 sm:$0xff]  }
  0xb4   : > { %2835 = vmatmul.mubr.bf16.gmra.mrb[60].mxu0 %v5232_v21  ;;  %4778 = vmatprep.subr.bf16.mxu1 %v5235_v22  ;;  %v5335_v21 = vld [vmem:[%s6762_s13 + $0x40] sm:$0xff]   ;;  %v5311_v22 = vld [vmem:[%s5921_s18 + $0x50] ss:$12 sps:$4 sm:$0xff]  }
  0xb5   : > { %4435 = vmatprep.mubr.msk.bf16.mxu0 %vm2761_vm2, %v5239_v23  ;;  %3092 = vmatpush1.bf16.msra.mxu0 %v5247_v24  ;;  %v5312_v23 = vld [vmem:[%s6761_s12 + $0x10] sm:$0xff]  }
  0xb6   : > { %4881 = vmatmul.mubr.msk.bf16.gmra.mrb[12].mxu1 %vm1755_vm1, %v5234_v25  ;;  %3093 = vmatprep.subr.bf16.mxu0 %v5480_v17  ;;  %v5317_v24 = vld [vmem:[%s5921_s18 + $0x68] ss:$12 sps:$4 sm:$0xff]   ;;  %v5313_v25 = vld [vmem:[%s6761_s12 + $0x18] sm:$0xff]  }
  0xb7   : > { %4779 = vmatpush3.bf16.msra.mxu1 %v5236_v26  ;;  %2423 = vmatprep.mubr.bf16.mxu1 %v5244_v27  ;;  %v5318_v26 = vld [vmem:[%s5986_s26 + $0x50] ss:$8 sps:$4 sm:$0xff]   ;;  %v5323_v27 = vld [vmem:[%s5986_s26 + $0x64] ss:$8 sps:$4 sm:$0xff]  }
  0xb8   : > { %4780 = vmatprep.subr.bf16.mxu1 %v5237_v28  ;;  %v5319_v28 = vld [vmem:[%s5921_s18 + $0x80] ss:$12 sps:$4 sm:$0xff]  }
  0xb9   : > { %3094 = vmatpush1.bf16.msra.mxu0 %v5254_v29  ;;  %v5320_v29 = vld [vmem:[%s6761_s12 + $0x20] sm:$0xff]  }
  0xba   : > { %3095 = vmatprep.subr.bf16.mxu0 %v5480_v17 }
  0xbb   : > { %4781 = vmatpush3.bf16.msra.mxu1 %v5238_v30  ;;  %v5325_v30 = vld [vmem:[%s5921_s18 + $0x98] ss:$12 sps:$4 sm:$0xff]  }
  0xbc   : > { %2843 = vmatmul.mubr.bf16.gmra.mrb[64].mxu0 %v5245_v31  ;;  %4884 = vmatprep.subr.bf16.mxu1 %v5246_v32 }
  0xbd   : > { %4436 = vmatprep.mubr.msk.bf16.mxu0 %vm2761_vm2, %v5248_v33  ;;  %3096 = vmatpush1.bf16.msra.mxu0 %v5261_v34 }
  0xbe   : > { %2424 = vmatmul.mubr.bf16.vlgmr.msra.gmra.mrb[60].mxu1 %v5242_v35  ;;  %3097 = vmatprep.subr.bf16.mxu0 %v5480_v17  ;;  %v5322_v35 = vld [vmem:[%s6761_s12 + $0x28] sm:$0xff]  }
  0xbf   : > { %4885 = vmatpush3.bf16.msra.mxu1 %v5246_v32  ;;  %2431 = vmatprep.mubr.bf16.mxu1 %v5250_v36  ;;  %v5326_v36 = vld [vmem:[%s5986_s26 + $0x60] ss:$8 sps:$4 sm:$0xff]  }
  0xc0   : > { %4886 = vmatprep.subr.bf16.mxu1 %v5276_v37 }
  0xc1   : > { %3098 = vmatpush1.bf16.msra.mxu0 %v5268_v38  ;;  %v5331_v38 = vld [vmem:[%s5986_s26 + $0x74] ss:$8 sps:$4 sm:$0xff]  }
  0xc2   : > { %3099 = vmatprep.subr.bf16.mxu0 %v5480_v17 }
  0xc3   : > { %4887 = vmatpush3.bf16.msra.mxu1 %v5276_v37 }
  0xc4   : > { %2851 = vmatmul.mubr.bf16.gmra.mrb[68].mxu0 %v5252_v39  ;;  %3380 = vmatprep.subr.bf16.mxu1 %v5480_v17 }
  0xc5   : > { %4437 = vmatprep.mubr.msk.bf16.mxu0 %vm2761_vm2, %v5255_v40  ;;  %3100 = vmatpush1.bf16.msra.mxu0 %v5275_v41  ;;  %v5327_v40 = vld [vmem:[%s5921_s18 + $0xb0] ss:$12 sps:$4 sm:$0xff]  }
  0xc6   : > { %2432 = vmatmul.mubr.bf16.gmra.mrb[64].mxu1 %v5253_v42  ;;  %3677 = vmatprep.subr.bf16.mxu0 %v5480_v17  ;;  %v5328_v41 = vld [vmem:[%s6761_s12 + $0x30] sm:$0xff]   ;;  %v5338_v42 = vld [vmem:[%s6067_s23 + $0x4] ss:$8 sps:$4 sm:$0xff]  }
  0xc7   : > { %2439 = vmatprep.mubr.bf16.mxu1 %v5257_v43 }
  0xcc   : > { %2859 = vmatmul.mubr.bf16.gmra.mrb[72].mxu0 %v5259_v44 }
  0xcd   : > { %4438 = vmatprep.mubr.msk.bf16.mxu0 %vm2761_vm2, %v5262_v45  ;;  %v5330_v45 = vld [vmem:[%s6761_s12 + $0x38] sm:$0xff]  }
  0xce   : > { %2440 = vmatmul.mubr.bf16.gmra.mrb[68].mxu1 %v5260_v46  ;;  %v5333_v46 = vld [vmem:[%s5986_s26 + $0x70] ss:$8 sps:$4 sm:$0xff]  }
  0xcf   : > { %2447 = vmatprep.mubr.bf16.mxu1 %v5264_v47 }
  0xd4   : > { %2867 = vmatmul.mubr.bf16.gmra.mrb[76].mxu0 %v5266_v48 }
  0xd5   : > { %4439 = vmatprep.mubr.msk.bf16.mxu0 %vm2761_vm2, %v5269_v49  ;;  %v5341_v49 = vld [vmem:[%s6073_s30 + $0x4] ss:$8 sps:$4 sm:$0xff]  }
  0xd6   : > { %2448 = vmatmul.mubr.bf16.gmra.mrb[72].mxu1 %v5267_v50 }
  0xd7   : > { %2455 = vmatprep.mubr.bf16.mxu1 %v5271_v51 }
  0xdc   : > { %2875 = vmatmul.mubr.bf16.gmra.mrb[80].mxu0 %v5273_v52 }
  0xdd   : > { %4465 = vmatprep.mubr.msk.bf16.mxu0 %vm2761_vm2, %v5279_v53 }
  0xde   : > { %2456 = vmatmul.mubr.bf16.gmra.mrb[76].mxu1 %v5274_v54 }
  0xdf   : > { %2463 = vmatprep.mubr.bf16.mxu1 %v5280_v55 }
  0xe4   : > { %3116 = vmatmul.mubr.bf16.vlgmr.msra.gmra.mrb[84].mxu0 %v5277_v56  ;;  %v5334_v56 = vld [vmem:[%s6761_s12 + $0x40] sm:$0xff]  }
  0xe5   : > { %3678 = vmatpush1.bf16.msra.mxu0 %v5283_v57  ;;  %4466 = vmatprep.mubr.msk.bf16.mxu0 %vm2761_vm2, %v5284_v58 }
  0xe6   : > { %3679 = vmatprep.subr.bf16.mxu0 %v5480_v17  ;;  %2464 = vmatmul.mubr.bf16.gmra.mrb[80].mxu1 %v5282_v59 }
  0xe7   : > { %2471 = vmatprep.mubr.bf16.mxu1 %v5286_v60 }
  0xe9   : > { %3680 = vmatpush1.bf16.msra.mxu0 %v5290_v61  ;;  %v5336_v61 = vld [vmem:[%s6067_s23] ss:$8 sps:$4 sm:$0xff]  }
  0xea   : > { %3681 = vmatprep.subr.bf16.mxu0 %v5480_v17 }
  0xec   : > { %3124 = vmatmul.mubr.bf16.gmra.mrb[88].mxu0 %v5288_v62 }
  0xed   : > { %4467 = vmatprep.mubr.msk.bf16.mxu0 %vm2761_vm2, %v5291_v63  ;;  %3682 = vmatpush1.bf16.msra.mxu0 %v5296_v0  ;;  %v5339_v0 = vld [vmem:[%s6073_s30] ss:$8 sps:$4 sm:$0xff]  }
  0xee   : > { %3683 = vmatprep.subr.bf16.mxu0 %v5480_v17  ;;  %2472 = vmatmul.mubr.bf16.gmra.mrb[84].mxu1 %v5289_v1  ;;  %v5342_v1 = vld [vmem:[%s6067_s23 + $0x14] ss:$8 sps:$4 sm:$0xff]  }
  0xef   : > { %2479 = vmatprep.mubr.bf16.mxu1 %v5293_v2 }
  0xf1   : > { %3684 = vmatpush1.bf16.msra.mxu0 %v5300_v3 }
  0xf2   : > { %3685 = vmatprep.subr.bf16.mxu0 %v5480_v17 }
  0xf4   : > { %3132 = vmatmul.mubr.bf16.gmra.mrb[92].mxu0 %v5295_v4  ;;  %v5345_v4 = vld [vmem:[%s6073_s30 + $0x14] ss:$8 sps:$4 sm:$0xff]  }
  0xf5   : > { %4468 = vmatprep.mubr.msk.bf16.mxu0 %vm2761_vm2, %v5298_v5  ;;  %3686 = vmatpush1.bf16.msra.mxu0 %v5306_v6 }
  0xf6   : > { %3687 = vmatprep.subr.bf16.mxu0 %v5480_v17  ;;  %2480 = vmatmul.mubr.bf16.gmra.mrb[88].mxu1 %v5297_v7 }
  0xf7   : > { %4888 = vmatprep.mubr.msk.bf16.mxu1 %vm1120_vm0, %v5301_v8 }
  0xf9   : > { %3688 = vmatpush1.bf16.msra.mxu0 %v5314_v9 }
  0xfa   : > { %3689 = vmatprep.subr.bf16.mxu0 %v5480_v17 }
  0xfc   : > { %3140 = vmatmul.mubr.bf16.gmra.mrb[96].mxu0 %v5302_v10 }
  0xfd   : > { %4469 = vmatprep.mubr.msk.bf16.mxu0 %vm2761_vm2, %v5307_v11  ;;  %3690 = vmatpush1.bf16.msra.mxu0 %v5321_v12 }
  0xfe   : > { %3691 = vmatprep.subr.bf16.mxu0 %v5480_v17  ;;  %4889 = vmatmul.mubr.msk.bf16.vlgmr.msra.gmra.mrb[0].mxu1 %vm1120_vm0, %v5303_v13 }
  0xff   : > { %3381 = vmatpush1.bf16.msra.mxu1 %v5304_v14  ;;  %4892 = vmatprep.mubr.msk.bf16.mxu1 %vm1120_vm0, %v5309_v15  ;;  %v5344_v14 = vld [vmem:[%s6067_s23 + $0x10] ss:$8 sps:$4 sm:$0xff]  }
 0x100   : > { %3382 = vmatprep.subr.bf16.mxu1 %v5480_v17 }
 0x101   : > { %3692 = vmatpush1.bf16.msra.mxu0 %v5329_v16 }
 0x102   : > { %3693 = vmatprep.subr.bf16.mxu0 %v5480_v17 }
 0x103   : > { %3383 = vmatpush1.bf16.msra.mxu1 %v5305_v18  ;;  %v5347_v18 = vld [vmem:[%s6073_s30 + $0x10] ss:$8 sps:$4 sm:$0xff]  }
 0x104   : > { %3148 = vmatmul.mubr.bf16.gmra.mrb[100].mxu0 %v5310_v19  ;;  %3384 = vmatprep.subr.bf16.mxu1 %v5480_v17  ;;  %v5348_v19 = vld [vmem:[%s6067_s23 + $0x24] ss:$8 sps:$4 sm:$0xff]  }
 0x105   : > { %4470 = vmatprep.mubr.msk.bf16.mxu0 %vm2761_vm2, %v5315_v20  ;;  %3694 = vmatpush1.bf16.msra.mxu0 %v5335_v21 }
 0x106   : > { %4893 = vmatmul.mubr.msk.bf16.gmra.mrb[4].mxu1 %vm1120_vm0, %v5311_v22  ;;  %v5351_v22 = vld [vmem:[%s6073_s30 + $0x24] ss:$8 sps:$4 sm:$0xff]  }
 0x107   : > { %3385 = vmatpush1.bf16.msra.mxu1 %v5312_v23  ;;  %4896 = vmatprep.mubr.msk.bf16.mxu1 %vm1120_vm0, %v5317_v24 }
 0x108   : > { %3386 = vmatprep.subr.bf16.mxu1 %v5480_v17 }
 0x10b   : > { %3387 = vmatpush1.bf16.msra.mxu1 %v5313_v25 }
 0x10c   : > { %3156 = vmatmul.mubr.bf16.gmra.mrb[104].mxu0 %v5318_v26  ;;  %3388 = vmatprep.subr.bf16.mxu1 %v5480_v17 }
 0x10d   : > { %4471 = vmatprep.mubr.msk.bf16.mxu0 %vm2761_vm2, %v5323_v27 }
 0x10e   : > { %4897 = vmatmul.mubr.msk.bf16.gmra.mrb[8].mxu1 %vm1120_vm0, %v5319_v28 }
 0x10f   : > { %v4568_v31 = vpop.f32.mrb[0].mxu0  ;;  %3389 = vmatpush1.bf16.msra.mxu1 %v5320_v29  ;;  %4900 = vmatprep.mubr.msk.bf16.mxu1 %vm1120_vm0, %v5325_v30 }
 0x110   : > { %v4569_v32 = vpop.f32.mrb[1].mxu0  ;;  %3390 = vmatprep.subr.bf16.mxu1 %v5480_v17 }
 0x111   : > { %v4570_v33 = vadd.f32 %v4569_v32, %v4568_v31  ;;  %v4571_v34 = vpop.f32.mrb[2].mxu0 }
 0x112   : > { %v4572_v37 = vpop.f32.mrb[3].mxu0 }
 0x113   : > { %v4573_v39 = vadd.f32 %v4572_v37, %v4571_v34  ;;  %3391 = vmatpush1.bf16.msra.mxu1 %v5322_v35  ;;  %v5354_v37 = vld [vmem:[%s6067_s23 + $0x34] ss:$8 sps:$4 sm:$0xff]  }
 0x114   : > { %3164 = vmatmul.mubr.bf16.gmra.mrb[108].mxu0 %v5326_v36  ;;  %3392 = vmatprep.subr.bf16.mxu1 %v5480_v17  ;;  %v5353_v36 = vld [vmem:[%s6073_s30 + $0x20] ss:$8 sps:$4 sm:$0xff]  }
 0x115   : > { %4472 = vmatprep.mubr.msk.bf16.mxu0 %vm2761_vm2, %v5331_v38 }
 0x116   : > { %4901 = vmatmul.mubr.msk.bf16.gmra.mrb[12].mxu1 %vm1120_vm0, %v5327_v40  ;;  %v5357_v40 = vld [vmem:[%s6073_s30 + $0x34] ss:$8 sps:$4 sm:$0xff]  }
 0x117   : > { %v4574_v43 = vpop.f32.mrb[4].mxu0  ;;  %3393 = vmatpush1.bf16.msra.mxu1 %v5328_v41  ;;  %4498 = vmatprep.mubr.msk.bf16.mxu1 %vm2761_vm2, %v5338_v42 }
 0x118   : > { %v4575_v44 = vpop.f32.mrb[5].mxu0  ;;  %3394 = vmatprep.subr.bf16.mxu1 %v5480_v17 }
 0x119   : > { %v4576_v47 = vadd.f32 %v4575_v44, %v4574_v43  ;;  %v4577_v48 = vpop.f32.mrb[6].mxu0  ;;  %v4642_v50 = vpop.f32.mrb[16].mxu1 }
 0x11a   : > { %v4578_v51 = vpop.f32.mrb[7].mxu0  ;;  %v4643_v52 = vpop.f32.mrb[17].mxu1 }
 0x11b   : > { %v4579_v53 = vadd.f32 %v4578_v51, %v4577_v48  ;;  %v4644_v54 = vadd.f32 %v4643_v52, %v4642_v50  ;;  %3395 = vmatpush1.bf16.msra.mxu1 %v5330_v45  ;;  %v4645_v55 = vpop.f32.mrb[18].mxu1  ;;  %v5356_v51 = vld [vmem:[%s6067_s23 + $0x30] ss:$8 sps:$4 sm:$0xff]  }
 0x11c   : > { %3172 = vmatmul.mubr.bf16.gmra.mrb[112].mxu0 %v5333_v46  ;;  %v4646_v57 = vpop.f32.mrb[19].mxu1  ;;  %3396 = vmatprep.subr.bf16.mxu1 %v5480_v17 }
 0x11d   : > { %4531 = vmatprep.mubr.msk.bf16.mxu0 %vm2761_vm2, %v5341_v49  ;;  %v6197_v58 = vadd.f32 %v4644_v54, %v4570_v33  ;;  %v4647_v59 = vadd.f32 %v4646_v57, %v4645_v55  ;;  %v5350_v33 = vld [vmem:[%s6067_s23 + $0x20] ss:$8 sps:$4 sm:$0xff]   ;;  %v5359_v54 = vld [vmem:[%s6073_s30 + $0x30] ss:$8 sps:$4 sm:$0xff]   ;;  %v5360_v55 = vld [vmem:[%s6067_s23 + $0x44] ss:$8 sps:$4 sm:$0xff]  }
 0x11f   : > { %v4580_v60 = vpop.f32.mrb[8].mxu0  ;;  %v6200_v62 = vadd.f32 %v4647_v59, %v4573_v39  ;;  %3397 = vmatpush1.bf16.msra.mxu1 %v5334_v56  ;;  %v5363_v59 = vld [vmem:[%s6073_s30 + $0x44] ss:$8 sps:$4 sm:$0xff]  }
 0x120   : > { %v4581_v63 = vpop.f32.mrb[9].mxu0 }
 0x121   : > { %v4582_v2 = vadd.f32 %v4581_v63, %v4580_v60  ;;  %v4583_v3 = vpop.f32.mrb[10].mxu0  ;;  %v4648_v5 = vpop.f32.mrb[20].mxu1 }
 0x122   : > { %v4584_v6 = vpop.f32.mrb[11].mxu0  ;;  %3413 = vmatmul.mubr.bf16.vlgmr.msra.gmra.mrb[92].mxu1 %v5336_v61  ;;  %v4649_v17 = vpop.f32.mrb[21].mxu1 }
 0x123   : > { %v4585_v7 = vadd.f32 %v4584_v6, %v4583_v3  ;;  %v4650_v8 = vadd.f32 %v4649_v17, %v4648_v5  ;;  %v4651_v9 = vpop.f32.mrb[22].mxu1  ;;  %4499 = vmatprep.mubr.msk.bf16.mxu1 %vm2761_vm2, %v5342_v1  ;;  %v5362_v17 = vld [vmem:[%s6067_s23 + $0x40] ss:$8 sps:$4 sm:$0xff]  }
 0x124   : > { %3710 = vmatmul.mubr.bf16.vlgmr.msra.gmra.mrb[116].mxu0 %v5339_v0  ;;  %v4652_v10 = vpop.f32.mrb[23].mxu1 }
 0x125   : > { %4532 = vmatprep.mubr.msk.bf16.mxu0 %vm2761_vm2, %v5345_v4  ;;  %v6207_v11 = vadd.f32 %v4650_v8, %v4576_v47  ;;  %v4653_v12 = vadd.f32 %v4652_v10, %v4651_v9  ;;  %v5365_v9 = vld [vmem:[%s6073_s30 + $0x40] ss:$8 sps:$4 sm:$0xff]   ;;  %v5366_v10 = vld [vmem:[%s6067_s23 + $0x54] ss:$8 sps:$4 sm:$0xff]  }
 0x127   : > { %v4586_v13 = vpop.f32.mrb[12].mxu0  ;;  %v6210_v15 = vadd.f32 %v4653_v12, %v4579_v53 }
 0x128   : > { %v4587_v16 = vpop.f32.mrb[13].mxu0 }
 0x129   : > { %v4588_v20 = vadd.f32 %v4587_v16, %v4586_v13  ;;  %v4589_v21 = vpop.f32.mrb[14].mxu0  ;;  %v4654_v23 = vpop.f32.mrb[24].mxu1 }
 0x12a   : > { %v4590_v24 = vpop.f32.mrb[15].mxu0  ;;  %3421 = vmatmul.mubr.bf16.gmra.mrb[96].mxu1 %v5344_v14  ;;  %v4655_v25 = vpop.f32.mrb[25].mxu1  ;;  %v5369_v14 = vld [vmem:[%s6073_s30 + $0x54] ss:$8 sps:$4 sm:$0xff]  }
 0x12b   : > { %v4591_v26 = vadd.f32 %v4590_v24, %v4589_v21  ;;  %v4656_v27 = vadd.f32 %v4655_v25, %v4654_v23  ;;  %v4657_v28 = vpop.f32.mrb[26].mxu1  ;;  %4500 = vmatprep.mubr.msk.bf16.mxu1 %vm2761_vm2, %v5348_v19 }
 0x12c   : > { %3718 = vmatmul.mubr.bf16.gmra.mrb[120].mxu0 %v5347_v18  ;;  %v4658_v29 = vpop.f32.mrb[27].mxu1 }
 0x12d   : > { %4533 = vmatprep.mubr.msk.bf16.mxu0 %vm2761_vm2, %v5351_v22  ;;  %v6217_v30 = vadd.f32 %v4656_v27, %v4582_v2  ;;  %v4659_v31 = vadd.f32 %v4658_v29, %v4657_v28  ;;  %v5368_v27 = vld [vmem:[%s6067_s23 + $0x50] ss:$8 sps:$4 sm:$0xff]  }
 0x12f   : > { %v4592_v32 = vpop.f32.mrb[16].mxu0  ;;  %v6220_v34 = vadd.f32 %v4659_v31, %v4585_v7  ;;  %v5371_v31 = vld [vmem:[%s6073_s30 + $0x50] ss:$8 sps:$4 sm:$0xff]  }
 0x130   : > { %v4593_v35 = vpop.f32.mrb[17].mxu0 }
 0x131   : > { %v4594_v38 = vadd.f32 %v4593_v35, %v4592_v32  ;;  %v4595_v39 = vpop.f32.mrb[18].mxu0  ;;  %v4660_v41 = vpop.f32.mrb[28].mxu1  ;;  %v5372_v32 = vld [vmem:[%s6067_s23 + $0x64] ss:$8 sps:$4 sm:$0xff]  }
 0x132   : > { %v4596_v42 = vpop.f32.mrb[19].mxu0  ;;  %3429 = vmatmul.mubr.bf16.gmra.mrb[100].mxu1 %v5350_v33  ;;  %v4661_v43 = vpop.f32.mrb[29].mxu1 }
 0x133   : > { %v4597_v44 = vadd.f32 %v4596_v42, %v4595_v39  ;;  %v4662_v45 = vadd.f32 %v4661_v43, %v4660_v41  ;;  %v4663_v46 = vpop.f32.mrb[30].mxu1  ;;  %4501 = vmatprep.mubr.msk.bf16.mxu1 %vm2761_vm2, %v5354_v37 }
 0x134   : > { %3726 = vmatmul.mubr.bf16.gmra.mrb[124].mxu0 %v5353_v36  ;;  %v4664_v47 = vpop.f32.mrb[31].mxu1  ;;  %v5375_v36 = vld [vmem:[%s6073_s30 + $0x64] ss:$8 sps:$4 sm:$0xff]  }
 0x135   : > { %4534 = vmatprep.mubr.msk.bf16.mxu0 %vm2761_vm2, %v5357_v40  ;;  %v6227_v48 = vadd.f32 %v4662_v45, %v4588_v20  ;;  %v4665_v49 = vadd.f32 %v4664_v47, %v4663_v46  ;;  %v5374_v47 = vld [vmem:[%s6067_s23 + $0x60] ss:$8 sps:$4 sm:$0xff]  }
 0x137   : > { %v4598_v50 = vpop.f32.mrb[20].mxu0  ;;  %v6230_v52 = vadd.f32 %v4665_v49, %v4591_v26 }
 0x138   : > { %v4599_v53 = vpop.f32.mrb[21].mxu0 }
 0x139   : > { %v4600_v56 = vadd.f32 %v4599_v53, %v4598_v50  ;;  %v4601_v57 = vpop.f32.mrb[22].mxu0  ;;  %v4666_v60 = vpop.f32.mrb[32].mxu1  ;;  %v5378_v53 = vld [vmem:[%s6067_s23 + $0x74] ss:$8 sps:$4 sm:$0xff]  }
 0x13a   : > { %v4602_v61 = vpop.f32.mrb[23].mxu0  ;;  %3437 = vmatmul.mubr.bf16.gmra.mrb[104].mxu1 %v5356_v51  ;;  %v4667_v63 = vpop.f32.mrb[33].mxu1  ;;  %v5377_v51 = vld [vmem:[%s6073_s30 + $0x60] ss:$8 sps:$4 sm:$0xff]  }
 0x13b   : > { %v4603_v0 = vadd.f32 %v4602_v61, %v4601_v57  ;;  %v4668_v1 = vadd.f32 %v4667_v63, %v4666_v60  ;;  %v4669_v2 = vpop.f32.mrb[34].mxu1  ;;  %4502 = vmatprep.mubr.msk.bf16.mxu1 %vm2761_vm2, %v5360_v55 }
 0x13c   : > { %3734 = vmatmul.mubr.bf16.gmra.mrb[128].mxu0 %v5359_v54  ;;  %v4670_v3 = vpop.f32.mrb[35].mxu1 }
 0x13d   : > { %4535 = vmatprep.mubr.msk.bf16.mxu0 %vm2761_vm2, %v5363_v59  ;;  %v6237_v4 = vadd.f32 %v4668_v1, %v4594_v38  ;;  %v4671_v5 = vadd.f32 %v4670_v3, %v4669_v2 }
 0x13f   : > { %v4604_v6 = vpop.f32.mrb[24].mxu0  ;;  %v6240_v7 = vadd.f32 %v4671_v5, %v4597_v44 }
 0x140   : > { %v4605_v8 = vpop.f32.mrb[25].mxu0 }
 0x141   : > { %v4606_v12 = vadd.f32 %v4605_v8, %v4604_v6  ;;  %v4607_v13 = vpop.f32.mrb[26].mxu0  ;;  %v4672_v16 = vpop.f32.mrb[36].mxu1 }
 0x142   : > { %v4608_v18 = vpop.f32.mrb[27].mxu0  ;;  %3445 = vmatmul.mubr.bf16.gmra.mrb[108].mxu1 %v5362_v17  ;;  %v4673_v19 = vpop.f32.mrb[37].mxu1 }
 0x143   : > { %v4609_v20 = vadd.f32 %v4608_v18, %v4607_v13  ;;  %v4674_v21 = vadd.f32 %v4673_v19, %v4672_v16  ;;  %v4675_v22 = vpop.f32.mrb[38].mxu1  ;;  %4503 = vmatprep.mubr.msk.bf16.mxu1 %vm2761_vm2, %v5366_v10  ;;  %v5383_v10 = vld [vmem:[%s6073_s30 + $0x70] ss:$8 sps:$4 sm:$0xff]  }
 0x144   : > { %3742 = vmatmul.mubr.bf16.gmra.mrb[132].mxu0 %v5365_v9  ;;  %v4676_v23 = vpop.f32.mrb[39].mxu1 }
 0x145   : > { %4536 = vmatprep.mubr.msk.bf16.mxu0 %vm2761_vm2, %v5369_v14  ;;  %v6247_v24 = vadd.f32 %v4674_v21, %v4600_v56  ;;  %v4677_v25 = vadd.f32 %v4676_v23, %v4675_v22  ;;  %v5381_v56 = vld [vmem:[%s6073_s30 + $0x74] ss:$8 sps:$4 sm:$0xff]   ;;  %s5416_s30 = scalar_lea.vmem %s6701_s29, 2048 }
 0x146   : > { %p5417_p11 = scmp.ne.s32.totalorder %s6701_s29, %s5416_s30  ;;  %p5424_p1 = scmp.lt.s32.totalorder %s5422_s19, %s5416_s30 }
 0x147   : > { %v4610_v26 = vpop.f32.mrb[28].mxu0  ;;  %v6250_v28 = vadd.f32 %v4677_v25, %v4603_v0 }
 0x148   : > { %v4611_v29 = vpop.f32.mrb[29].mxu0  ;;  %p5418_p12 = pnand %p5417_p11, %p5612_p5  ;;  %p5425_p2 = por %p5424_p1, %p5423_p0 }
 0x149   : > { %v4612_v33 = vadd.f32 %v4611_v29, %v4610_v26  ;;  %v4613_v35 = vpop.f32.mrb[30].mxu0  ;;  %v4678_v37 = vpop.f32.mrb[40].mxu1 }
 0x14a   : > { %v4614_v38 = vpop.f32.mrb[31].mxu0  ;;  %3453 = vmatmul.mubr.bf16.gmra.mrb[112].mxu1 %v5368_v27  ;;  %v4679_v39 = vpop.f32.mrb[41].mxu1  ;;  %p5419_p13 = pneg %p5418_p12 }
 0x14b   : > { %v4615_v40 = vadd.f32 %v4614_v38, %v4613_v35  ;;  %v4680_v41 = vadd.f32 %v4679_v39, %v4678_v37  ;;  %v4681_v42 = vpop.f32.mrb[42].mxu1  ;;  %4504 = vmatprep.mubr.msk.bf16.mxu1 %vm2761_vm2, %v5372_v32 }
 0x14c   : > { %3750 = vmatmul.mubr.bf16.gmra.mrb[136].mxu0 %v5371_v31  ;;  %v4682_v43 = vpop.f32.mrb[43].mxu1  ;;  %p5426_p3 = pnand %p5425_p2, %p5419_p13 }
 0x14d   : > { %4537 = vmatprep.mubr.msk.bf16.mxu0 %vm2761_vm2, %v5375_v36  ;;  %v4972_v44 = vadd.f32 %v4680_v41, %v4606_v12  ;;  %v4683_v45 = vadd.f32 %v4682_v43, %v4681_v42 }
 0x14f   : > { %v4706_v46 = vpop.f32.mrb[32].mxu0  ;;  %v4980_v49 = vadd.f32 %v4683_v45, %v4609_v20 }
 0x150   : > { %v4707_v50 = vpop.f32.mrb[33].mxu0 }
 0x151   : > { %v4708_v54 = vadd.f32 %v4707_v50, %v4706_v46  ;;  %v4709_v55 = vpop.f32.mrb[34].mxu0  ;;  %v4684_v57 = vpop.f32.mrb[44].mxu1 }
 0x152   : > { %v4710_v59 = vpop.f32.mrb[35].mxu0  ;;  %3461 = vmatmul.mubr.bf16.gmra.mrb[116].mxu1 %v5374_v47  ;;  %v4685_v61 = vpop.f32.mrb[45].mxu1 }
 0x153   : > { %v6262_v60 = vadd.f32 %v6197_v58, %v4708_v54  ;;  %v4711_v63 = vadd.f32 %v4710_v59, %v4709_v55  ;;  %v4686_v0 = vadd.f32 %v4685_v61, %v4684_v57  ;;  %v4687_v1 = vpop.f32.mrb[46].mxu1  ;;  %4505 = vmatprep.mubr.msk.bf16.mxu1 %vm2761_vm2, %v5378_v53  ;;  %v5380_v58 = vld [vmem:[%s6067_s23 + $0x70] ss:$8 sps:$4 sm:$0xff]   ;;  %s6699_s23 = scalar_lea.hbm %s6766_s17, %s4551_s22 }
 0x154   : > { %3758 = vmatmul.mubr.bf16.gmra.mrb[140].mxu0 %v5377_v51  ;;  %v4688_v3 = vpop.f32.mrb[47].mxu1 }
 0x155   : > { %v6266_v2 = vadd.f32 %v6200_v62, %v4711_v63  ;;  %4538 = vmatprep.mubr.msk.bf16.mxu0 %vm2761_vm2, %v5381_v56  ;;  %v4968_v5 = vadd.f32 %v4686_v0, %v4612_v33  ;;  %v4689_v6 = vadd.f32 %v4688_v3, %v4687_v1 }
 0x157   : > { %v4712_v17 = vpop.f32.mrb[36].mxu0  ;;  %v4976_v8 = vadd.f32 %v4689_v6, %v4615_v40 }
 0x158   : > { %v4713_v9 = vpop.f32.mrb[37].mxu0 }
 0x159   : > { %v4714_v12 = vadd.f32 %v4713_v9, %v4712_v17  ;;  %v4715_v13 = vpop.f32.mrb[38].mxu0  ;;  %v4736_v14 = vpop.f32.mrb[48].mxu1 }
 0x15a   : > { %v4716_v16 = vpop.f32.mrb[39].mxu0  ;;  %3469 = vmatmul.mubr.bf16.gmra.mrb[120].mxu1 %v5380_v58  ;;  %v4737_v62 = vpop.f32.mrb[49].mxu1 }
 0x15b   : > { %v6272_v18 = vadd.f32 %v6207_v11, %v4714_v12  ;;  %v4717_v19 = vadd.f32 %v4716_v16, %v4715_v13  ;;  %v4738_v20 = vadd.f32 %v4737_v62, %v4736_v14  ;;  %v4739_v21 = vpop.f32.mrb[50].mxu1 }
 0x15c   : > { %3766 = vmatmul.mubr.bf16.gmra.mrb[144].mxu0 %v5383_v10  ;;  %v4740_v23 = vpop.f32.mrb[51].mxu1 }
 0x15d   : > { %v6275_v22 = vadd.f32 %v6210_v15, %v4717_v19  ;;  %v6278_v25 = vadd.f32 %v6247_v24, %v4738_v20  ;;  %v4741_v26 = vadd.f32 %v4740_v23, %v4739_v21 }
 0x15f   : > { %v4718_v27 = vpop.f32.mrb[40].mxu0  ;;  %v6281_v29 = vadd.f32 %v6250_v28, %v4741_v26 }
 0x160   : > { %v4719_v11 = vpop.f32.mrb[41].mxu0 }
 0x161   : > { %v4720_v31 = vadd.f32 %v4719_v11, %v4718_v27  ;;  %v4721_v32 = vpop.f32.mrb[42].mxu0  ;;  %v4742_v33 = vpop.f32.mrb[52].mxu1 }
 0x162   : > { %v4722_v35 = vpop.f32.mrb[43].mxu0  ;;  %v4743_v37 = vpop.f32.mrb[53].mxu1 }
 0x163   : > { %v6284_v36 = vadd.f32 %v6217_v30, %v4720_v31  ;;  %v4723_v15 = vadd.f32 %v4722_v35, %v4721_v32  ;;  %v4744_v38 = vadd.f32 %v4743_v37, %v4742_v33  ;;  %v4745_v39 = vpop.f32.mrb[54].mxu1 }
 0x164   : > { %v4746_v40 = vpop.f32.mrb[55].mxu1 }
 0x165   : > { %v6287_v24 = vadd.f32 %v6220_v34, %v4723_v15  ;;  %v6289_v41 = vadd.f32 %v4972_v44, %v4744_v38  ;;  %v4747_v28 = vadd.f32 %v4746_v40, %v4745_v39 }
 0x167   : > { %v4724_v42 = vpop.f32.mrb[44].mxu0  ;;  %v6291_v43 = vadd.f32 %v4980_v49, %v4747_v28 }
 0x168   : > { %v4725_v45 = vpop.f32.mrb[45].mxu0 }
 0x169   : > { %v4726_v46 = vadd.f32 %v4725_v45, %v4724_v42  ;;  %v4727_v47 = vpop.f32.mrb[46].mxu0  ;;  %v4748_v50 = vpop.f32.mrb[56].mxu1 }
 0x16a   : > { %v4728_v30 = vpop.f32.mrb[47].mxu0  ;;  %v4749_v53 = vpop.f32.mrb[57].mxu1 }
 0x16b   : > { %v6294_v51 = vadd.f32 %v6227_v48, %v4726_v46  ;;  %v4729_v54 = vadd.f32 %v4728_v30, %v4727_v47  ;;  %v4750_v55 = vadd.f32 %v4749_v53, %v4748_v50  ;;  %v4751_v34 = vpop.f32.mrb[58].mxu1 }
 0x16c   : > { %v4752_v44 = vpop.f32.mrb[59].mxu1 }
 0x16d   : > { %v6297_v56 = vadd.f32 %v6230_v52, %v4729_v54  ;;  %v6299_v57 = vadd.f32 %v4968_v5, %v4750_v55  ;;  %v4753_v49 = vadd.f32 %v4752_v44, %v4751_v34 }
 0x16f   : > { %v4730_v59 = vpop.f32.mrb[48].mxu0  ;;  %v6301_v61 = vadd.f32 %v4976_v8, %v4753_v49 }
 0x170   : > { %v4731_v63 = vpop.f32.mrb[49].mxu0 }
 0x171   : > { %v4732_v0 = vadd.f32 %v4731_v63, %v4730_v59  ;;  %v4733_v1 = vpop.f32.mrb[50].mxu0 }
 0x172   : > { %v4734_v3 = vpop.f32.mrb[51].mxu0 }
 0x173   : > { %v6304_v48 = vadd.f32 %v6237_v4, %v4732_v0  ;;  %v4735_v6 = vadd.f32 %v4734_v3, %v4733_v1 }
 0x175   : > { %v6307_v17 = vadd.f32 %v6240_v7, %v4735_v6 }
 0x177   : > { %v6309_v52 = vpop.f32.mrb[52].mxu0 }
 0x178   : > { %v2822_v58 = vpop.f32.mrb[53].mxu0 }
 0x179   : > { %v6311_v5 = vpop.f32.mrb[54].mxu0 }
 0x17a   : > { %v2825_v9 = vpop.f32.mrb[55].mxu0 }
 0x17f   : > { %v6313_v10 = vpop.f32.mrb[56].mxu0 }
 0x180   : > { %v2830_v8 = vpop.f32.mrb[57].mxu0 }
 0x181   : > { %v6315_v12 = vpop.f32.mrb[58].mxu0 }
 0x182   : > { %v2833_v13 = vpop.f32.mrb[59].mxu0 }
 0x187   : > { %v6317_v14 = vpop.f32.mrb[60].mxu0 }
 0x188   : > { %v2838_v4 = vpop.f32.mrb[61].mxu0 }
 0x189   : > { %v6319_v16 = vpop.f32.mrb[62].mxu0 }
 0x18a   : > { %v2841_v62 = vpop.f32.mrb[63].mxu0 }
 0x18f   : > { %v6321_v7 = vpop.f32.mrb[64].mxu0 }
 0x190   : > { %v2846_v19 = vpop.f32.mrb[65].mxu0 }
 0x191   : > { %v6323_v20 = vpop.f32.mrb[66].mxu0  ;;  %v4782_v21 = vpop.f32.mrb[60].mxu1 }
 0x192   : > { %v2849_v23 = vpop.f32.mrb[67].mxu0  ;;  %v4783_v26 = vpop.f32.mrb[61].mxu1 }
 0x193   : > { %v4784_v27 = vadd.f32 %v4783_v26, %v4782_v21  ;;  %v4785_v11 = vpop.f32.mrb[62].mxu1 }
 0x194   : > { %v4786_v31 = vpop.f32.mrb[63].mxu1 }
 0x195   : > { %v4787_v32 = vadd.f32 %v4786_v31, %v4785_v11  ;;  %v6326_v33 = vadd.f32 %v6262_v60, %v4784_v27 }
 0x197   : > { %v6328_v35 = vpop.f32.mrb[68].mxu0  ;;  %v6331_v15 = vadd.f32 %v6266_v2, %v4787_v32 }
 0x198   : > { %v2854_v37 = vpop.f32.mrb[69].mxu0 }
 0x199   : > { %v6333_v38 = vpop.f32.mrb[70].mxu0  ;;  %v4788_v39 = vpop.f32.mrb[64].mxu1 }
 0x19a   : > { %v2857_v40 = vpop.f32.mrb[71].mxu0  ;;  %v4789_v28 = vpop.f32.mrb[65].mxu1 }
 0x19b   : > { %v4790_v42 = vadd.f32 %v4789_v28, %v4788_v39  ;;  %v4791_v45 = vpop.f32.mrb[66].mxu1 }
 0x19c   : > { %v4792_v46 = vpop.f32.mrb[67].mxu1 }
 0x19d   : > { %v4793_v47 = vadd.f32 %v4792_v46, %v4791_v45  ;;  %v6336_v50 = vadd.f32 %v6272_v18, %v4790_v42 }
 0x19f   : > { %v6338_v60 = vpop.f32.mrb[72].mxu0  ;;  %v6341_v53 = vadd.f32 %v6275_v22, %v4793_v47 }
 0x1a0   : > { %v2862_v30 = vpop.f32.mrb[73].mxu0 }
 0x1a1   : > { %v6343_v2 = vpop.f32.mrb[74].mxu0  ;;  %v4794_v54 = vpop.f32.mrb[68].mxu1 }
 0x1a2   : > { %v2865_v55 = vpop.f32.mrb[75].mxu0  ;;  %v4795_v34 = vpop.f32.mrb[69].mxu1 }
 0x1a3   : > { %v4796_v44 = vadd.f32 %v4795_v34, %v4794_v54  ;;  %v4797_v49 = vpop.f32.mrb[70].mxu1 }
 0x1a4   : > { %v4798_v59 = vpop.f32.mrb[71].mxu1 }
 0x1a5   : > { %v4799_v63 = vadd.f32 %v4798_v59, %v4797_v49  ;;  %v6346_v0 = vadd.f32 %v6284_v36, %v4796_v44 }
 0x1a7   : > { %v6348_v18 = vpop.f32.mrb[76].mxu0  ;;  %v6351_v3 = vadd.f32 %v6287_v24, %v4799_v63 }
 0x1a8   : > { %v2870_v1 = vpop.f32.mrb[77].mxu0 }
 0x1a9   : > { %v6353_v22 = vpop.f32.mrb[78].mxu0  ;;  %v4800_v6 = vpop.f32.mrb[72].mxu1 }
 0x1aa   : > { %v2873_v58 = vpop.f32.mrb[79].mxu0  ;;  %v4801_v9 = vpop.f32.mrb[73].mxu1 }
 0x1ab   : > { %v4802_v8 = vadd.f32 %v4801_v9, %v4800_v6  ;;  %v4803_v13 = vpop.f32.mrb[74].mxu1 }
 0x1ac   : > { %v4804_v4 = vpop.f32.mrb[75].mxu1 }
 0x1ad   : > { %v4805_v62 = vadd.f32 %v4804_v4, %v4803_v13  ;;  %v6356_v19 = vadd.f32 %v6294_v51, %v4802_v8 }
 0x1af   : > { %v6358_v36 = vpop.f32.mrb[80].mxu0  ;;  %v6361_v23 = vadd.f32 %v6297_v56, %v4805_v62 }
 0x1b0   : > { %v2878_v21 = vpop.f32.mrb[81].mxu0 }
 0x1b1   : > { %v6363_v24 = vpop.f32.mrb[82].mxu0  ;;  %v4806_v26 = vpop.f32.mrb[76].mxu1 }
 0x1b2   : > { %v2881_v27 = vpop.f32.mrb[83].mxu0  ;;  %v4807_v11 = vpop.f32.mrb[77].mxu1 }
 0x1b3   : > { %v4808_v31 = vadd.f32 %v4807_v11, %v4806_v26  ;;  %v4809_v32 = vpop.f32.mrb[78].mxu1 }
 0x1b4   : > { %v4810_v37 = vpop.f32.mrb[79].mxu1 }
 0x1b5   : > { %v4811_v39 = vadd.f32 %v4810_v37, %v4809_v32  ;;  %v6366_v40 = vadd.f32 %v6304_v48, %v4808_v31 }
 0x1b7   : > { %v3117_v51 = vpop.f32.mrb[84].mxu0  ;;  %v6369_v42 = vadd.f32 %v6307_v17, %v4811_v39 }
 0x1b8   : > { %v3119_v28 = vpop.f32.mrb[85].mxu0 }
 0x1b9   : > { %v3120_v45 = vpop.f32.mrb[86].mxu0  ;;  %v4812_v56 = vpop.f32.mrb[80].mxu1 }
 0x1ba   : > { %v3122_v46 = vpop.f32.mrb[87].mxu0  ;;  %v4813_v47 = vpop.f32.mrb[81].mxu1 }
 0x1bb   : > { %v4814_v30 = vadd.f32 %v4813_v47, %v4812_v56  ;;  %v4815_v54 = vpop.f32.mrb[82].mxu1 }
 0x1bc   : > { %v4816_v55 = vpop.f32.mrb[83].mxu1 }
 0x1bd   : > { %v4817_v34 = vadd.f32 %v4816_v55, %v4815_v54  ;;  %v6372_v44 = vadd.f32 %v6278_v25, %v4814_v30 }
 0x1bf   : > { %v3125_v49 = vpop.f32.mrb[88].mxu0  ;;  %v6375_v48 = vadd.f32 %v6281_v29, %v4817_v34 }
 0x1c0   : > { %v3127_v59 = vpop.f32.mrb[89].mxu0 }
 0x1c1   : > { %v3128_v63 = vpop.f32.mrb[90].mxu0  ;;  %v4818_v1 = vpop.f32.mrb[84].mxu1 }
 0x1c2   : > { %v3130_v17 = vpop.f32.mrb[91].mxu0  ;;  %v4819_v6 = vpop.f32.mrb[85].mxu1 }
 0x1c3   : > { %v4820_v58 = vadd.f32 %v4819_v6, %v4818_v1  ;;  %v4821_v9 = vpop.f32.mrb[86].mxu1 }
 0x1c4   : > { %v4822_v8 = vpop.f32.mrb[87].mxu1 }
 0x1c5   : > { %v4823_v13 = vadd.f32 %v4822_v8, %v4821_v9  ;;  %v6378_v4 = vadd.f32 %v6289_v41, %v4820_v58 }
 0x1c7   : > { %v3133_v62 = vpop.f32.mrb[92].mxu0  ;;  %v6381_v25 = vadd.f32 %v6291_v43, %v4823_v13 }
 0x1c8   : > { %v3135_v21 = vpop.f32.mrb[93].mxu0 }
 0x1c9   : > { %v3136_v26 = vpop.f32.mrb[94].mxu0  ;;  %v4824_v27 = vpop.f32.mrb[88].mxu1 }
 0x1ca   : > { %v3138_v29 = vpop.f32.mrb[95].mxu0  ;;  %v4825_v11 = vpop.f32.mrb[89].mxu1 }
 0x1cb   : > { %v4826_v31 = vadd.f32 %v4825_v11, %v4824_v27  ;;  %v4827_v32 = vpop.f32.mrb[90].mxu1 }
 0x1cc   : > { %v4828_v37 = vpop.f32.mrb[91].mxu1 }
 0x1cd   : > { %v4829_v39 = vadd.f32 %v4828_v37, %v4827_v32  ;;  %v6384_v28 = vadd.f32 %v6299_v57, %v4826_v31 }
 0x1cf   : > { %v3141_v56 = vpop.f32.mrb[96].mxu0  ;;  %v6387_v41 = vadd.f32 %v6301_v61, %v4829_v39 }
 0x1d0   : > { %v3143_v46 = vpop.f32.mrb[97].mxu0 }
 0x1d1   : > { %v3144_v47 = vpop.f32.mrb[98].mxu0  ;;  %v4890_v30 = vpop.f32.mrb[0].mxu1 }
 0x1d2   : > { %v3146_v43 = vpop.f32.mrb[99].mxu0  ;;  %v4923_v54 = vadd.f32 %v6336_v50, %v4890_v30  ;;  %v2522_v55 = vpop.f32.mrb[1].mxu1 }
 0x1d3   : > { %v4927_v34 = vadd.f32 %v6326_v33, %v2522_v55  ;;  %v4891_v59 = vpop.f32.mrb[2].mxu1 }
 0x1d4   : > { %v2885_v1 = vadd.f32 %v4923_v54, %v6313_v10  ;;  %v4931_v17 = vadd.f32 %v6341_v53, %v4891_v59  ;;  %v2525_v57 = vpop.f32.mrb[3].mxu1 }
 0x1d5   : > { %v2883_v6 = vadd.f32 %v4927_v34, %v6309_v52  ;;  %v4935_v58 = vadd.f32 %v6331_v15, %v2525_v57 }
 0x1d6   : > { %v2886_v61 = vadd.f32 %v4931_v17, %v6315_v12  ;;  %v6396_v8 = vadd.f32 %v3125_v49, %v2885_v1 }
 0x1d7   : > { %v3149_v9 = vpop.f32.mrb[100].mxu0  ;;  %v2884_v50 = vadd.f32 %v4935_v58, %v6311_v5  ;;  %v6399_v21 = vadd.f32 %v3117_v51, %v2883_v6 }
 0x1d8   : > { %v3151_v13 = vpop.f32.mrb[101].mxu0  ;;  %v6401_v27 = vadd.f32 %v3128_v63, %v2886_v61 }
 0x1d9   : > { %v3152_v33 = vpop.f32.mrb[102].mxu0  ;;  %v4894_v10 = vpop.f32.mrb[4].mxu1  ;;  %v6403_v29 = vadd.f32 %v3120_v45, %v2884_v50 }
 0x1da   : > { %v3154_v53 = vpop.f32.mrb[103].mxu0  ;;  %v4939_v52 = vadd.f32 %v6356_v19, %v4894_v10  ;;  %v2538_v15 = vpop.f32.mrb[5].mxu1 }
 0x1db   : > { %v4943_v12 = vadd.f32 %v6346_v0, %v2538_v15  ;;  %v4895_v11 = vpop.f32.mrb[6].mxu1 }
 0x1dc   : > { %v2889_v49 = vadd.f32 %v4939_v52, %v6321_v7  ;;  %v4947_v5 = vadd.f32 %v6361_v23, %v4895_v11  ;;  %v2541_v31 = vpop.f32.mrb[7].mxu1 }
 0x1dd   : > { %v2887_v51 = vadd.f32 %v4943_v12, %v6317_v14  ;;  %v4951_v63 = vadd.f32 %v6351_v3, %v2541_v31 }
 0x1de   : > { %v2890_v32 = vadd.f32 %v4947_v5, %v6323_v20  ;;  %v6412_v45 = vadd.f32 %v3141_v56, %v2889_v49 }
 0x1df   : > { %v3157_v37 = vpop.f32.mrb[104].mxu0  ;;  %v2888_v19 = vadd.f32 %v4951_v63, %v6319_v16  ;;  %v6415_v46 = vadd.f32 %v3133_v62, %v2887_v51 }
 0x1e0   : > { %v3159_v39 = vpop.f32.mrb[105].mxu0  ;;  %v6417_v30 = vadd.f32 %v3144_v47, %v2890_v32 }
 0x1e1   : > { %v3160_v0 = vpop.f32.mrb[106].mxu0  ;;  %v4898_v7 = vpop.f32.mrb[8].mxu1  ;;  %v6419_v43 = vadd.f32 %v3136_v26, %v2888_v19 }
 0x1e2   : > { %v3162_v23 = vpop.f32.mrb[107].mxu0  ;;  %v4955_v14 = vadd.f32 %v6372_v44, %v4898_v7  ;;  %v2554_v3 = vpop.f32.mrb[9].mxu1 }
 0x1e3   : > { %v4959_v20 = vadd.f32 %v6366_v40, %v2554_v3  ;;  %v4899_v54 = vpop.f32.mrb[10].mxu1 }
 0x1e4   : > { %v2893_v56 = vadd.f32 %v4955_v14, %v6338_v60  ;;  %v4963_v16 = vadd.f32 %v6375_v48, %v4899_v54  ;;  %v2557_v55 = vpop.f32.mrb[11].mxu1 }
 0x1e5   : > { %v2891_v62 = vadd.f32 %v4959_v20, %v6328_v35  ;;  %v4967_v47 = vadd.f32 %v6369_v42, %v2557_v55 }
 0x1e6   : > { %v2894_v34 = vadd.f32 %v4963_v16, %v6343_v2  ;;  %v6428_v26 = vadd.f32 %v3157_v37, %v2893_v56 }
 0x1e7   : > { %v3165_v59 = vpop.f32.mrb[108].mxu0  ;;  %v2892_v44 = vadd.f32 %v4967_v47, %v6333_v38  ;;  %v6431_v17 = vadd.f32 %v3149_v9, %v2891_v62 }
 0x1e8   : > { %v3167_v1 = vpop.f32.mrb[109].mxu0  ;;  %v6433_v57 = vadd.f32 %v3160_v0, %v2894_v34 }
 0x1e9   : > { %v3168_v40 = vpop.f32.mrb[110].mxu0  ;;  %v4902_v60 = vpop.f32.mrb[12].mxu1  ;;  %v6435_v6 = vadd.f32 %v3152_v33, %v2892_v44 }
 0x1ea   : > { %v3170_v48 = vpop.f32.mrb[111].mxu0  ;;  %v4971_v35 = vadd.f32 %v6384_v28, %v4902_v60  ;;  %v2570_v42 = vpop.f32.mrb[13].mxu1 }
 0x1eb   : > { %v4975_v2 = vadd.f32 %v6378_v4, %v2570_v42  ;;  %v4903_v58 = vpop.f32.mrb[14].mxu1 }
 0x1ec   : > { %v4979_v61 = vadd.f32 %v6387_v41, %v4903_v58  ;;  %v2573_v50 = vpop.f32.mrb[15].mxu1  ;;  %v2897_v38 = vadd.f32 %v4971_v35, %v6358_v36 }
 0x1ed   : > { %v2895_v9 = vadd.f32 %v4975_v2, %v6348_v18  ;;  %v4983_v13 = vadd.f32 %v6381_v25, %v2573_v50 }
 0x1ee   : > { %v2898_v53 = vadd.f32 %v4979_v61, %v6363_v24 }
 0x1ef   : > { %v3173_v10 = vpop.f32.mrb[112].mxu0  ;;  %v2896_v33 = vadd.f32 %v4983_v13, %v6353_v22  ;;  %v6447_v15 = vadd.f32 %v3165_v59, %v2895_v9  ;;  %v6457_v22 = vld [vmem:[%s6763_s14] ss:$0 sm:$0xff] }
 0x1f0   : > { %v6445_v52 = vadd.f32 %v3173_v10, %v2897_v38  ;;  %v3175_v28 = vpop.f32.mrb[113].mxu0 }
 0x1f1   : > { %v3176_v4 = vpop.f32.mrb[114].mxu0  ;;  %v6451_v11 = vadd.f32 %v3168_v40, %v2896_v33 }
 0x1f2   : > { %v6449_v12 = vadd.f32 %v3176_v4, %v2898_v53  ;;  %v3178_v41 = vpop.f32.mrb[115].mxu0 }
 0x1f5   : > { %v3414_v36 = vpop.f32.mrb[92].mxu1 }
 0x1f6   : > { %v3477_v18 = vadd.f32 %v3414_v36, %v6399_v21  ;;  %v3416_v25 = vpop.f32.mrb[93].mxu1 }
 0x1f7   : > { %v3711_v49 = vpop.f32.mrb[116].mxu0  ;;  %v3417_v5 = vpop.f32.mrb[94].mxu1 }
 0x1f8   : > { %v3713_v24 = vpop.f32.mrb[117].mxu0  ;;  %v3478_v31 = vadd.f32 %v3417_v5, %v6403_v29  ;;  %v3419_v51 = vpop.f32.mrb[95].mxu1  ;;  %v3774_v63 = vadd.f32 %v3711_v49, %v3477_v18 }
 0x1f9   : > { %v3714_v32 = vpop.f32.mrb[118].mxu0 }
 0x1fa   : > { %v3716_v37 = vpop.f32.mrb[119].mxu0  ;;  %v3775_v19 = vadd.f32 %v3714_v32, %v3478_v31  ;;  %v6461_v39 = vadd.f32 %v6457_v22, %v3774_v63 }
 0x1fc   : > { %3813 = vadd.xlane.f32.xlu0 %v6461_v39  ;;  %v6466_v14 = vadd.f32 %v6457_v22, %v3775_v19 }
 0x1fd   : > { %v3422_v21 = vpop.f32.mrb[96].mxu1 }
 0x1fe   : > { %v3479_v0 = vadd.f32 %v3422_v21, %v6396_v8  ;;  %v3424_v7 = vpop.f32.mrb[97].mxu1 }
 0x1ff   : > { %v3719_v23 = vpop.f32.mrb[120].mxu0  ;;  %v3425_v3 = vpop.f32.mrb[98].mxu1 }
 0x200   : > { %v3721_v29 = vpop.f32.mrb[121].mxu0  ;;  %v3480_v20 = vadd.f32 %v3425_v3, %v6401_v27  ;;  %v3427_v54 = vpop.f32.mrb[99].mxu1  ;;  %v3776_v56 = vadd.f32 %v3719_v23, %v3479_v0  ;;  %3815 = vadd.xlane.f32.xlu0 %v6466_v14 }
 0x201   : > { %v3722_v16 = vpop.f32.mrb[122].mxu0 }
 0x202   : > { %v3724_v55 = vpop.f32.mrb[123].mxu0  ;;  %v3777_v62 = vadd.f32 %v3722_v16, %v3480_v20  ;;  %v6471_v47 = vadd.f32 %v6457_v22, %v3776_v56 }
 0x204   : > { %3817 = vadd.xlane.f32.xlu1 %v6471_v47  ;;  %v6476_v1 = vadd.f32 %v6457_v22, %v3777_v62 }
 0x205   : > { %v3430_v8 = vpop.f32.mrb[100].mxu1 }
 0x206   : > { %v3481_v34 = vadd.f32 %v3430_v8, %v6415_v46  ;;  %v3432_v59 = vpop.f32.mrb[101].mxu1 }
 0x207   : > { %v3727_v44 = vpop.f32.mrb[124].mxu0  ;;  %v3433_v27 = vpop.f32.mrb[102].mxu1 }
 0x208   : > { %v3729_v40 = vpop.f32.mrb[125].mxu0  ;;  %v3482_v60 = vadd.f32 %v3433_v27, %v6419_v43  ;;  %v3435_v48 = vpop.f32.mrb[103].mxu1  ;;  %v3778_v35 = vadd.f32 %v3727_v44, %v3481_v34  ;;  %3819 = vadd.xlane.f32.xlu1 %v6476_v1 }
 0x209   : > { %v3730_v42 = vpop.f32.mrb[126].mxu0 }
 0x20a   : > { %v3732_v2 = vpop.f32.mrb[127].mxu0  ;;  %v3779_v58 = vadd.f32 %v3730_v42, %v3482_v60  ;;  %v6481_v61 = vadd.f32 %v6457_v22, %v3778_v35 }
 0x20c   : > { %3821 = vadd.xlane.f32.xlu0 %v6481_v61  ;;  %v6485_v46 = vadd.f32 %v6457_v22, %v3779_v58 }
 0x20d   : > { %v3438_v50 = vpop.f32.mrb[104].mxu1 }
 0x20e   : > { %v3483_v38 = vadd.f32 %v3438_v50, %v6412_v45  ;;  %v3440_v9 = vpop.f32.mrb[105].mxu1  ;;  %3823 = vadd.xlane.f32.xlu1 %v6485_v46 }
 0x20f   : > { %v3735_v43 = vpop.f32.mrb[128].mxu0  ;;  %v3441_v13 = vpop.f32.mrb[106].mxu1 }
 0x210   : > { %v3737_v10 = vpop.f32.mrb[129].mxu0  ;;  %v3484_v53 = vadd.f32 %v3441_v13, %v6417_v30  ;;  %v3443_v33 = vpop.f32.mrb[107].mxu1  ;;  %v3780_v28 = vadd.f32 %v3735_v43, %v3483_v38 }
 0x211   : > { %v3738_v4 = vpop.f32.mrb[130].mxu0 }
 0x212   : > { %v3740_v41 = vpop.f32.mrb[131].mxu0  ;;  %v3781_v36 = vadd.f32 %v3738_v4, %v3484_v53  ;;  %v6491_v18 = vadd.f32 %v6457_v22, %v3780_v28 }
 0x214   : > { %3825 = vadd.xlane.f32.xlu0 %v6491_v18  ;;  %v6495_v45 = vadd.f32 %v6457_v22, %v3781_v36 }
 0x215   : > { %v3446_v25 = vpop.f32.mrb[108].mxu1 }
 0x216   : > { %v3485_v49 = vadd.f32 %v3446_v25, %v6431_v17  ;;  %v3448_v5 = vpop.f32.mrb[109].mxu1  ;;  %3827 = vadd.xlane.f32.xlu1 %v6495_v45 }
 0x217   : > { %v3743_v30 = vpop.f32.mrb[132].mxu0  ;;  %v3449_v24 = vpop.f32.mrb[110].mxu1 }
 0x218   : > { %v3745_v31 = vpop.f32.mrb[133].mxu0  ;;  %v3486_v51 = vadd.f32 %v3449_v24, %v6435_v6  ;;  %v3451_v63 = vpop.f32.mrb[111].mxu1  ;;  %v3782_v32 = vadd.f32 %v3743_v30, %v3485_v49 }
 0x219   : > { %v3746_v37 = vpop.f32.mrb[134].mxu0 }
 0x21a   : > { %v3748_v19 = vpop.f32.mrb[135].mxu0  ;;  %v3783_v21 = vadd.f32 %v3746_v37, %v3486_v51  ;;  %v6501_v0 = vadd.f32 %v6457_v22, %v3782_v32 }
 0x21c   : > { %3829 = vadd.xlane.f32.xlu0 %v6501_v0  ;;  %v6505_v17 = vadd.f32 %v6457_v22, %v3783_v21 }
 0x21d   : > { %v3454_v7 = vpop.f32.mrb[112].mxu1 }
 0x21e   : > { %v3487_v23 = vadd.f32 %v3454_v7, %v6428_v26  ;;  %v3456_v3 = vpop.f32.mrb[113].mxu1  ;;  %3831 = vadd.xlane.f32.xlu1 %v6505_v17 }
 0x21f   : > { %v3751_v6 = vpop.f32.mrb[136].mxu0  ;;  %v3457_v29 = vpop.f32.mrb[114].mxu1 }
 0x220   : > { %v3753_v20 = vpop.f32.mrb[137].mxu0  ;;  %v3488_v54 = vadd.f32 %v3457_v29, %v6433_v57  ;;  %v3459_v56 = vpop.f32.mrb[115].mxu1  ;;  %v3784_v16 = vadd.f32 %v3751_v6, %v3487_v23 }
 0x221   : > { %v3754_v55 = vpop.f32.mrb[138].mxu0 }
 0x222   : > { %v3756_v62 = vpop.f32.mrb[139].mxu0  ;;  %v3785_v8 = vadd.f32 %v3754_v55, %v3488_v54  ;;  %v6511_v34 = vadd.f32 %v6457_v22, %v3784_v16 }
 0x224   : > { %3833 = vadd.xlane.f32.xlu0 %v6511_v34  ;;  %v6515_v26 = vadd.f32 %v6457_v22, %v3785_v8 }
 0x225   : > { %v3462_v59 = vpop.f32.mrb[116].mxu1 }
 0x226   : > { %v3489_v44 = vadd.f32 %v3462_v59, %v6447_v15  ;;  %v3464_v27 = vpop.f32.mrb[117].mxu1  ;;  %3835 = vadd.xlane.f32.xlu1 %v6515_v26 }
 0x227   : > { %v3759_v57 = vpop.f32.mrb[140].mxu0  ;;  %v3465_v40 = vpop.f32.mrb[118].mxu1 }
 0x228   : > { %v3761_v60 = vpop.f32.mrb[141].mxu0  ;;  %v3490_v48 = vadd.f32 %v3465_v40, %v6451_v11  ;;  %v3467_v35 = vpop.f32.mrb[119].mxu1  ;;  %v3786_v42 = vadd.f32 %v3759_v57, %v3489_v44 }
 0x229   : > { %v3762_v2 = vpop.f32.mrb[142].mxu0 }
 0x22a   : > { %v3764_v58 = vpop.f32.mrb[143].mxu0  ;;  %v3787_v50 = vadd.f32 %v3762_v2, %v3490_v48  ;;  %v6521_v38 = vadd.f32 %v6457_v22, %v3786_v42 }
 0x22c   : > { %3837 = vadd.xlane.f32.xlu0 %v6521_v38  ;;  %v6525_v15 = vadd.f32 %v6457_v22, %v3787_v50 }
 0x22d   : > { %v3470_v9 = vpop.f32.mrb[120].mxu1 }
 0x22e   : > { %v3491_v43 = vadd.f32 %v3470_v9, %v6445_v52  ;;  %v3472_v13 = vpop.f32.mrb[121].mxu1  ;;  %3839 = vadd.xlane.f32.xlu1 %v6525_v15 }
 0x22f   : > { %v3767_v11 = vpop.f32.mrb[144].mxu0  ;;  %v3473_v10 = vpop.f32.mrb[122].mxu1 }
 0x230   : > { %v3769_v53 = vpop.f32.mrb[145].mxu0  ;;  %v3492_v33 = vadd.f32 %v3473_v10, %v6449_v12  ;;  %v3475_v28 = vpop.f32.mrb[123].mxu1  ;;  %v3788_v4 = vadd.f32 %v3767_v11, %v3491_v43 }
 0x231   : > { %v3770_v41 = vpop.f32.mrb[146].mxu0 }
 0x232   : > { %v3772_v36 = vpop.f32.mrb[147].mxu0  ;;  %v3789_v25 = vadd.f32 %v3770_v41, %v3492_v33  ;;  %v6531_v49 = vadd.f32 %v6457_v22, %v3788_v4 }
 0x234   : > { %3841 = vadd.xlane.f32.xlu0 %v6531_v49  ;;  %v6535_v52 = vadd.f32 %v6457_v22, %v3789_v25 }
 0x236   : > { %3843 = vadd.xlane.f32.xlu1 %v6535_v52 }
 0x289   : > { %v3814_v5 = vpop.xlane.xlu0 %3813 }
 0x28a   : > { %v3846_v30 = vmul.f32 0.0078125, %v3814_v5 }
 0x28c   : > { %v6539_v24 = vsub.f32 %v6461_v39, %v3846_v30 }
 0x28d   : > { %v3816_v12 = vpop.xlane.xlu0 %3815 }
 0x28e   : > { %v3847_v31 = vmul.f32 0.0078125, %v3816_v12  ;;  %v3878_v51 = vmul.f32 %v6539_v24, %v6539_v24 }
 0x290   : > { %v6544_v63 = vsub.f32 %v6466_v14, %v3847_v31  ;;  %3894 = vadd.xlane.f32.xlu0 %v3878_v51 }
 0x291   : > { %v3818_v32 = vpop.xlane.xlu1 %3817 }
 0x292   : > { %v3848_v37 = vmul.f32 0.0078125, %v3818_v32  ;;  %v3879_v22 = vmul.f32 %v6544_v63, %v6544_v63 }
 0x294   : > { %v6549_v19 = vsub.f32 %v6471_v47, %v3848_v37  ;;  %3896 = vadd.xlane.f32.xlu1 %v3879_v22 }
 0x295   : > { %v3820_v39 = vpop.xlane.xlu1 %3819 }
 0x296   : > { %v3849_v21 = vmul.f32 0.0078125, %v3820_v39  ;;  %v3880_v7 = vmul.f32 %v6549_v19, %v6549_v19 }
 0x298   : > { %v6554_v23 = vsub.f32 %v6476_v1, %v3849_v21  ;;  %3898 = vadd.xlane.f32.xlu0 %v3880_v7 }
 0x299   : > { %v3822_v14 = vpop.xlane.xlu0 %3821 }
 0x29a   : > { %v3850_v3 = vmul.f32 0.0078125, %v3822_v14  ;;  %v3881_v6 = vmul.f32 %v6554_v23, %v6554_v23 }
 0x29b   : > { %v3824_v29 = vpop.xlane.xlu1 %3823 }
 0x29c   : > { %v6559_v20 = vsub.f32 %v6481_v61, %v3850_v3  ;;  %v3851_v47 = vmul.f32 0.0078125, %v3824_v29  ;;  %3900 = vadd.xlane.f32.xlu1 %v3881_v6  ;;  %v6622_v3 = vld [vmem:[%s6764_s15] ss:$0 sm:$0xff] }
 0x29e   : > { %v6562_v54 = vsub.f32 %v6485_v46, %v3851_v47  ;;  %v3882_v56 = vmul.f32 %v6559_v20, %v6559_v20 }
 0x2a0   : > { %3902 = vadd.xlane.f32.xlu0 %v3882_v56  ;;  %v3883_v1 = vmul.f32 %v6562_v54, %v6562_v54  ;;  %v6630_v56 = vld [vmem:[%s6765_s16] ss:$0 sm:$0xff] }
 0x2a1   : > { %v3826_v16 = vpop.xlane.xlu0 %3825 }
 0x2a2   : > { %v3852_v55 = vmul.f32 0.0078125, %v3826_v16  ;;  %3904 = vadd.xlane.f32.xlu1 %v3883_v1 }
 0x2a3   : > { %v3828_v62 = vpop.xlane.xlu1 %3827 }
 0x2a4   : > { %v6569_v8 = vsub.f32 %v6491_v18, %v3852_v55  ;;  %v3853_v61 = vmul.f32 0.0078125, %v3828_v62 }
 0x2a6   : > { %v6572_v59 = vsub.f32 %v6495_v45, %v3853_v61  ;;  %v3884_v46 = vmul.f32 %v6569_v8, %v6569_v8 }
 0x2a8   : > { %3906 = vadd.xlane.f32.xlu0 %v3884_v46  ;;  %v3885_v44 = vmul.f32 %v6572_v59, %v6572_v59 }
 0x2a9   : > { %v3830_v27 = vpop.xlane.xlu0 %3829 }
 0x2aa   : > { %v3854_v57 = vmul.f32 0.0078125, %v3830_v27  ;;  %3908 = vadd.xlane.f32.xlu1 %v3885_v44 }
 0x2ab   : > { %v3832_v40 = vpop.xlane.xlu1 %3831 }
 0x2ac   : > { %v6579_v60 = vsub.f32 %v6501_v0, %v3854_v57  ;;  %v3855_v18 = vmul.f32 0.0078125, %v3832_v40 }
 0x2ae   : > { %v6582_v48 = vsub.f32 %v6505_v17, %v3855_v18  ;;  %v3886_v45 = vmul.f32 %v6579_v60, %v6579_v60 }
 0x2b0   : > { %3910 = vadd.xlane.f32.xlu0 %v3886_v45  ;;  %v3887_v35 = vmul.f32 %v6582_v48, %v6582_v48 }
 0x2b1   : > { %v3834_v42 = vpop.xlane.xlu0 %3833 }
 0x2b2   : > { %v3856_v2 = vmul.f32 0.0078125, %v3834_v42  ;;  %3912 = vadd.xlane.f32.xlu1 %v3887_v35 }
 0x2b3   : > { %v3836_v58 = vpop.xlane.xlu1 %3835 }
 0x2b4   : > { %v6589_v50 = vsub.f32 %v6511_v34, %v3856_v2  ;;  %v3857_v0 = vmul.f32 0.0078125, %v3836_v58 }
 0x2b6   : > { %v6592_v9 = vsub.f32 %v6515_v26, %v3857_v0  ;;  %v3888_v17 = vmul.f32 %v6589_v50, %v6589_v50 }
 0x2b8   : > { %3914 = vadd.xlane.f32.xlu0 %v3888_v17  ;;  %v3889_v43 = vmul.f32 %v6592_v9, %v6592_v9 }
 0x2b9   : > { %v3838_v13 = vpop.xlane.xlu0 %3837 }
 0x2ba   : > { %v3858_v11 = vmul.f32 0.0078125, %v3838_v13  ;;  %3916 = vadd.xlane.f32.xlu1 %v3889_v43 }
 0x2bb   : > { %v3840_v10 = vpop.xlane.xlu1 %3839 }
 0x2bc   : > { %v6599_v53 = vsub.f32 %v6521_v38, %v3858_v11  ;;  %v3859_v34 = vmul.f32 0.0078125, %v3840_v10 }
 0x2be   : > { %v6602_v33 = vsub.f32 %v6525_v15, %v3859_v34  ;;  %v3890_v26 = vmul.f32 %v6599_v53, %v6599_v53 }
 0x2c0   : > { %3918 = vadd.xlane.f32.xlu0 %v3890_v26  ;;  %v3891_v28 = vmul.f32 %v6602_v33, %v6602_v33 }
 0x2c1   : > { %v3842_v4 = vpop.xlane.xlu0 %3841 }
 0x2c2   : > { %v3860_v41 = vmul.f32 0.0078125, %v3842_v4  ;;  %3920 = vadd.xlane.f32.xlu1 %v3891_v28 }
 0x2c3   : > { %v3844_v36 = vpop.xlane.xlu1 %3843 }
 0x2c4   : > { %v6609_v25 = vsub.f32 %v6531_v49, %v3860_v41  ;;  %v3861_v38 = vmul.f32 0.0078125, %v3844_v36 }
 0x2c6   : > { %v6612_v5 = vsub.f32 %v6535_v52, %v3861_v38  ;;  %v3892_v15 = vmul.f32 %v6609_v25, %v6609_v25 }
 0x2c8   : > { %3922 = vadd.xlane.f32.xlu0 %v3892_v15  ;;  %v3893_v30 = vmul.f32 %v6612_v5, %v6612_v5 }
 0x2ca   : > { %3924 = vadd.xlane.f32.xlu1 %v3893_v30 }
 0x31d   : > { %v3895_v12 = vpop.xlane.xlu0 %3894 }
 0x31e   : > { %v3926_v31 = vmul.f32 0.0078125, %v3895_v12 }
 0x320   : > { %v3942_v51 = vadd.f32 1e-05, %v3926_v31 }
 0x321   : > { %v3897_v32 = vpop.xlane.xlu1 %3896 }
 0x322   : > { %5384 = vrsqrt.f32 %v3942_v51  ;;  %v3927_v49 = vmul.f32 0.0078125, %v3897_v32 }
 0x324   : > { %v3943_v37 = vadd.f32 1e-05, %v3927_v49 }
 0x325   : > { %v3899_v22 = vpop.xlane.xlu0 %3898 }
 0x326   : > { %5386 = vrsqrt.f32 %v3943_v37  ;;  %v3928_v52 = vmul.f32 0.0078125, %v3899_v22 }
 0x328   : > { %v3944_v39 = vadd.f32 1e-05, %v3928_v52 }
 0x329   : > { %v3901_v21 = vpop.xlane.xlu1 %3900 }
 0x32a   : > { %5388 = vrsqrt.f32 %v3944_v39  ;;  %v3929_v7 = vmul.f32 0.0078125, %v3901_v21 }
 0x32c   : > { %v5385_v14 = vpop.eup %5384  ;;  %v3945_v6 = vadd.f32 1e-05, %v3929_v7 }
 0x32d   : > { %v3974_v29 = vmul.f32 %v5385_v14, %v6539_v24  ;;  %v3903_v47 = vpop.xlane.xlu0 %3902 }
 0x32e   : > { %5390 = vrsqrt.f32 %v3945_v6  ;;  %v3930_v1 = vmul.f32 0.0078125, %v3903_v47 }
 0x32f   : > { %v3997_v16 = vmul.f32 %v6622_v3, %v3974_v29  ;;  %v3905_v55 = vpop.xlane.xlu1 %3904 }
 0x330   : > { %v5387_v62 = vpop.eup %5386  ;;  %v3946_v61 = vadd.f32 1e-05, %v3930_v1  ;;  %v3931_v46 = vmul.f32 0.0078125, %v3905_v55 }
 0x331   : > { %v4020_v44 = vadd.f32 %v6630_v56, %v3997_v16  ;;  %v3975_v27 = vmul.f32 %v5387_v62, %v6544_v63 }
 0x332   : > { %5392 = vrsqrt.f32 %v3946_v61  ;;  %v3947_v24 = vadd.f32 1e-05, %v3931_v46 }
 0x333   : > { %4036 = vst [vmem:[%s6635_s0] sm:$0xff] %v4020_v44  ;;  %v3998_v57 = vmul.f32 %v6622_v3, %v3975_v27 }
 0x334   : > { %v5389_v40 = vpop.eup %5388  ;;  %5394 = vrsqrt.f32 %v3947_v24 }
 0x335   : > { %v4021_v18 = vadd.f32 %v6630_v56, %v3998_v57  ;;  %v3976_v45 = vmul.f32 %v5389_v40, %v6549_v19  ;;  %v3907_v35 = vpop.xlane.xlu0 %3906 }
 0x336   : > { %v3932_v42 = vmul.f32 0.0078125, %v3907_v35 }
 0x337   : > { %4037 = vst [vmem:[%s6635_s0 + $0x8] sm:$0xff] %v4021_v18  ;;  %v3999_v63 = vmul.f32 %v6622_v3, %v3976_v45  ;;  %v3909_v2 = vpop.xlane.xlu1 %3908 }
 0x338   : > { %v5391_v58 = vpop.eup %5390  ;;  %v3948_v0 = vadd.f32 1e-05, %v3932_v42  ;;  %v3933_v17 = vmul.f32 0.0078125, %v3909_v2 }
 0x339   : > { %v4022_v43 = vadd.f32 %v6630_v56, %v3999_v63  ;;  %v3977_v13 = vmul.f32 %v5391_v58, %v6554_v23 }
 0x33a   : > { %5396 = vrsqrt.f32 %v3948_v0  ;;  %v3949_v11 = vadd.f32 1e-05, %v3933_v17 }
 0x33b   : > { %4038 = vst [vmem:[%s6635_s0 + $0x10] sm:$0xff] %v4022_v43  ;;  %v4000_v10 = vmul.f32 %v6622_v3, %v3977_v13 }
 0x33c   : > { %v5393_v19 = vpop.eup %5392  ;;  %5398 = vrsqrt.f32 %v3949_v11 }
 0x33d   : > { %v4023_v34 = vadd.f32 %v6630_v56, %v4000_v10  ;;  %v3978_v26 = vmul.f32 %v5393_v19, %v6559_v20  ;;  %v3911_v28 = vpop.xlane.xlu0 %3910 }
 0x33e   : > { %v5395_v4 = vpop.eup %5394  ;;  %v3934_v41 = vmul.f32 0.0078125, %v3911_v28 }
 0x33f   : > { %4039 = vst [vmem:[%s6635_s0 + $0x18] sm:$0xff] %v4023_v34  ;;  %v4001_v36 = vmul.f32 %v6622_v3, %v3978_v26  ;;  %v3979_v23 = vmul.f32 %v5395_v4, %v6562_v54  ;;  %v3913_v38 = vpop.xlane.xlu1 %3912 }
 0x340   : > { %v3950_v15 = vadd.f32 1e-05, %v3934_v41  ;;  %v3935_v30 = vmul.f32 0.0078125, %v3913_v38 }
 0x341   : > { %v4024_v12 = vadd.f32 %v6630_v56, %v4001_v36  ;;  %v4002_v31 = vmul.f32 %v6622_v3, %v3979_v23 }
 0x342   : > { %5400 = vrsqrt.f32 %v3950_v15  ;;  %v3951_v51 = vadd.f32 1e-05, %v3935_v30 }
 0x343   : > { %4040 = vst [vmem:[%s6635_s0 + $0x20] sm:$0xff] %v4024_v12  ;;  %v4025_v20 = vadd.f32 %v6630_v56, %v4002_v31 }
 0x344   : > { %v5397_v32 = vpop.eup %5396  ;;  %5402 = vrsqrt.f32 %v3951_v51 }
 0x345   : > { %4041 = vst [vmem:[%s6635_s0 + $0x28] sm:$0xff] %v4025_v20  ;;  %v3980_v49 = vmul.f32 %v5397_v32, %v6569_v8  ;;  %v3915_v37 = vpop.xlane.xlu0 %3914 }
 0x346   : > { %v5399_v54 = vpop.eup %5398  ;;  %v3936_v22 = vmul.f32 0.0078125, %v3915_v37 }
 0x347   : > { %v4003_v52 = vmul.f32 %v6622_v3, %v3980_v49  ;;  %v3981_v39 = vmul.f32 %v5399_v54, %v6572_v59  ;;  %v3917_v21 = vpop.xlane.xlu1 %3916 }
 0x348   : > { %v3952_v7 = vadd.f32 1e-05, %v3936_v22  ;;  %v3937_v14 = vmul.f32 0.0078125, %v3917_v21 }
 0x349   : > { %v4026_v6 = vadd.f32 %v6630_v56, %v4003_v52  ;;  %v4004_v29 = vmul.f32 %v6622_v3, %v3981_v39 }
 0x34a   : > { %5404 = vrsqrt.f32 %v3952_v7  ;;  %v3953_v47 = vadd.f32 1e-05, %v3937_v14 }
 0x34b   : > { %4042 = vst [vmem:[%s6635_s0 + $0x30] sm:$0xff] %v4026_v6  ;;  %v4027_v8 = vadd.f32 %v6630_v56, %v4004_v29 }
 0x34c   : > { %v5401_v1 = vpop.eup %5400  ;;  %5406 = vrsqrt.f32 %v3953_v47 }
 0x34d   : > { %4043 = vst [vmem:[%s6635_s0 + $0x38] sm:$0xff] %v4027_v8  ;;  %v3982_v16 = vmul.f32 %v5401_v1, %v6579_v60  ;;  %v3919_v55 = vpop.xlane.xlu0 %3918 }
 0x34e   : > { %v5403_v59 = vpop.eup %5402  ;;  %v3938_v62 = vmul.f32 0.0078125, %v3919_v55 }
 0x34f   : > { %v4005_v61 = vmul.f32 %v6622_v3, %v3982_v16  ;;  %v3983_v46 = vmul.f32 %v5403_v59, %v6582_v48  ;;  %v3921_v44 = vpop.xlane.xlu1 %3920 }
 0x350   : > { %v3954_v27 = vadd.f32 1e-05, %v3938_v62  ;;  %v3939_v24 = vmul.f32 0.0078125, %v3921_v44 }
 0x351   : > { %v4028_v57 = vadd.f32 %v6630_v56, %v4005_v61  ;;  %v4006_v40 = vmul.f32 %v6622_v3, %v3983_v46 }
 0x352   : > { %5408 = vrsqrt.f32 %v3954_v27  ;;  %v3955_v18 = vadd.f32 1e-05, %v3939_v24 }
 0x353   : > { %4044 = vst [vmem:[%s6635_s0 + $0x40] sm:$0xff] %v4028_v57  ;;  %v4029_v60 = vadd.f32 %v6630_v56, %v4006_v40 }
 0x354   : > { %v5405_v45 = vpop.eup %5404  ;;  %5410 = vrsqrt.f32 %v3955_v18 }
 0x355   : > { %4045 = vst [vmem:[%s6635_s0 + $0x48] sm:$0xff] %v4029_v60  ;;  %v3984_v35 = vmul.f32 %v5405_v45, %v6589_v50  ;;  %v3923_v42 = vpop.xlane.xlu0 %3922 }
 0x356   : > { %v5407_v48 = vpop.eup %5406  ;;  %v3940_v63 = vmul.f32 0.0078125, %v3923_v42 }
 0x357   : > { %v4007_v2 = vmul.f32 %v6622_v3, %v3984_v35  ;;  %v3985_v58 = vmul.f32 %v5407_v48, %v6592_v9  ;;  %v3925_v0 = vpop.xlane.xlu1 %3924 }
 0x358   : > { %v3956_v17 = vadd.f32 1e-05, %v3940_v63  ;;  %v3941_v43 = vmul.f32 0.0078125, %v3925_v0 }
 0x359   : > { %v4030_v13 = vadd.f32 %v6630_v56, %v4007_v2  ;;  %v4008_v11 = vmul.f32 %v6622_v3, %v3985_v58 }
 0x35a   : > { %5412 = vrsqrt.f32 %v3956_v17  ;;  %v3957_v10 = vadd.f32 1e-05, %v3941_v43 }
 0x35b   : > { %4046 = vst [vmem:[%s6635_s0 + $0x50] sm:$0xff] %v4030_v13  ;;  %v4031_v50 = vadd.f32 %v6630_v56, %v4008_v11 }
 0x35c   : > { %v5409_v19 = vpop.eup %5408  ;;  %5414 = vrsqrt.f32 %v3957_v10 }
 0x35d   : > { %4047 = vst [vmem:[%s6635_s0 + $0x58] sm:$0xff] %v4031_v50  ;;  %v3986_v9 = vmul.f32 %v5409_v19, %v6599_v53 }
 0x35e   : > { %v5411_v34 = vpop.eup %5410 }
 0x35f   : > { %v4009_v26 = vmul.f32 %v6622_v3, %v3986_v9  ;;  %v3987_v28 = vmul.f32 %v5411_v34, %v6602_v33 }
 0x361   : > { %v4032_v4 = vadd.f32 %v6630_v56, %v4009_v26  ;;  %v4010_v41 = vmul.f32 %v6622_v3, %v3987_v28 }
 0x363   : > { %4048 = vst [vmem:[%s6635_s0 + $0x60] sm:$0xff] %v4032_v4  ;;  %v4033_v36 = vadd.f32 %v6630_v56, %v4010_v41 }
 0x364   : > { %v5413_v23 = vpop.eup %5412 }
 0x365   : > { %4049 = vst [vmem:[%s6635_s0 + $0x68] sm:$0xff] %v4033_v36  ;;  %v3988_v38 = vmul.f32 %v5413_v23, %v6609_v25 }
 0x366   : > { %v5415_v53 = vpop.eup %5414 }
 0x367   : > { %v4011_v15 = vmul.f32 %v6622_v3, %v3988_v38  ;;  %v3989_v33 = vmul.f32 %v5415_v53, %v6612_v5 }
 0x369   : > { %v4034_v30 = vadd.f32 %v6630_v56, %v4011_v15  ;;  %v4012_v12 = vmul.f32 %v6622_v3, %v3989_v33 }
 0x36b   : > { %4050 = vst [vmem:[%s6635_s0 + $0x70] sm:$0xff] %v4034_v30  ;;  %v4035_v25 = vadd.f32 %v6630_v56, %v4012_v12 }
 0x36d   : > { %4051 = vst [vmem:[%s6635_s0 + $0x78] sm:$0xff] %v4035_v25 }
 0x36e   : > { %5429 = shalt.err (!%p5426_p3)
}
 0x36f   : > { %s5430_s24 = scalar_lea.hbm %s6699_s23, 2048  ;;  %s5434_s0 = scalar_lea.hbm %s6766_s17, 4096 }
 0x370   : > { %p5431_p4 = scmp.ne.s32.totalorder %s6699_s23, %s5430_s24  ;;  %p5435_p9 = scmp.lt.u32.totalorder %s6699_s23, %s6766_s17 }
 0x371   : > { %p5436_p10 = scmp.lt.u32.totalorder %s5434_s0, %s5430_s24  ;;  %p5438_p12 = scmp.lt.u32.totalorder %s5430_s24, %s6699_s23 }
 0x372   : > { %p5432_p7 = pnand %p5431_p4, %p5612_p5 }
 0x373   : > { %p5437_p11 = por %p5436_p10, %p5435_p9 }
 0x374   : > { %p5433_p8 = pneg %p5432_p7 }
 0x375   : > { %p5439_p13 = por %p5438_p12, %p5437_p11 }
 0x377   : > { %p5440_p0 = pnand %p5439_p13, %p5433_p8 }
 0x379   : > { %5443 = shalt.err (!%p5440_p0)
}
 0x37a   : > { %s5482_s26 = smov 128   ;;  %s5483_s30 = smov 8  }
 0x37b   : > { %5018 = dma.vmem_to_hbm [thread:$0]  (%p5612_p5), %s6701_s29, 2048, %s6699_s23, %s6708_s28, %s5482_s26, %s5482_s26, %s5483_s30  }
 0x37c PF: > { %s6789_s8 = sld [smem:[#allocation7_spill]]  ;;  %s6790_s27 = sld [smem:[#allocation5_spill]] }
 0x382   : > { %p5024_p1 = scmp.ge.s32.totalorder %s6789_s8, 2  ;;  %s4081_s20 = sand.u32 1, %s6790_s27  }
 0x383   : > { %s4082_s24 = scalar_lea.sflag [#allocation3], %s4081_s20 }
 0x384   : > { %p5021_p2 = pnand %p5024_p1, %p5616_p6 }
 0x386   : > { %5461 = dma.done.wait (!%p5021_p2), %s4082_s24, 2048  }
 0x387   : > { %5463 = vsyncadd (!%p5021_p2), %s4082_s24, 4294965248  ;;  %s6792_s27 = sld [smem:[#allocation8_spill]]  ;;  %s6793_s21 = sld [smem:[#allocation6_spill]] }
 0x388   : > { %s6794_s26 = sld [smem:[#allocation9_spill]]  ;;  %s6795_s24 = smov %s5470_s25 }
 0x38d   : > { %p27_p3 = scmp.ge.s32.totalorder %s6792_s27, 4   ;;  %s6796_s25 = smov %s6793_s21 }
 0x38f   :  { %29 = sbr.rel (!%p27_p3) target bundleno = 7 (0x7), region = 141 }
 0x396   :  { %4087 = vsyncpa [#allocation3], 1 }
 0x397   :  { %4089 = vsyncpa [#allocation3 + $0x1], 1 }

</bundles_post_ra>
